<compile_context>
chip_gen: v6e
topology: v6e:2x2x1
jax: 0.10.0
libtpu: 0.0.40
codegen_flags: <defaults>
</compile_context>

<pallas_src>
import math
from functools import partial

import numpy as np

import jax
import jax.numpy as jnp
from jax import lax
from jax.experimental import pallas as pl
from jax.experimental.pallas import tpu as pltpu


# -----------------------------------------------------------------------------
# Deterministic DCT weight construction (mirrors DCTRecombination.mk_coff).
# -----------------------------------------------------------------------------
def _get_1d(ij, uv, N=8):
    return math.cos(math.pi * uv * (ij + 0.5) / N)


def _get_c(u, N=8):
    return math.sqrt(1.0 / N) if u == 0 else math.sqrt(2.0 / N)


def _get_order(src_weight, N=8):
    array_size = N * N
    i = 0
    j = 0
    rearranged = src_weight.copy()
    for k in range(array_size - 1):
        if (i == 0 or i == N - 1) and j % 2 == 0:
            j += 1
        elif (j == 0 or j == N - 1) and i % 2 == 1:
            i += 1
        elif (i + j) % 2 == 1:
            i += 1
            j -= 1
        elif (i + j) % 2 == 0:
            i -= 1
            j += 1
        index = i * N + j
        rearranged[k + 1, ...] = src_weight[index, ...]
    return rearranged


def mk_coff(N=8, rearrange=True):
    dct_weight = np.zeros((N * N, N, N), dtype=np.float64)
    for k in range(N * N):
        u = k // N
        v = k % N
        for i in range(N):
            for j in range(N):
                tmp = _get_1d(i, u, N=N) * _get_1d(j, v, N=N)
                tmp = tmp * _get_c(u, N=N) * _get_c(v, N=N)
                dct_weight[k, i, j] += tmp
    if rearrange:
        dct_weight = _get_order(dct_weight, N=N)
    return dct_weight.astype(np.float32)


# -----------------------------------------------------------------------------
# Pallas kernel: block-diagonal DCT matmul on element-major patches.
# -----------------------------------------------------------------------------
def _dct_kernel(w_ref, p_ref, o_ref):
    # w_ref: (M, K)  block-diagonal DCT weight (resident across the grid)
    # p_ref: (K, tp) element-major patches for Gb whole batch elements
    # o_ref: (M, tp) coefficient-major output (lane-dense stores for tp>=128)
    o_ref[...] = jnp.dot(
        w_ref[...],
        p_ref[...],
        precision=lax.Precision.HIGHEST,
        preferred_element_type=jnp.float32,
    ).astype(o_ref.dtype)


def _largest_divisor_at_most(n, cap):
    cap = max(1, min(n, cap))
    for d in range(cap, 0, -1):
        if n % d == 0:
            return d
    return 1


def _pick_tile(P, k_rows, m_rows):
    """Lane-dense patch-axis tile and VMEM limit, sized per TPU generation."""
    try:
        vmem_cap = int(pltpu.get_tpu_info().vmem_capacity_bytes)
    except Exception:
        vmem_cap = 64 * 1024 * 1024  # conservative fallback (v7x per-core)
    if vmem_cap >= 100 * 1024 * 1024:        # v5e / v6e: 128 MiB physical VMEM
        tp_cap, vmem_limit = 8192, 64 * 1024 * 1024
    else:                                    # v7x: 64 MiB per TensorCore
        tp_cap, vmem_limit = 4096, 32 * 1024 * 1024
    if P < 128:
        return P, vmem_limit
    tp = min(tp_cap, (P // 128) * 128)       # multiple of 128, never > P
    budget = int(0.75 * vmem_limit)          # double-buffered in+out tiles
    while tp > 128 and 2 * (k_rows + m_rows) * tp * 4 > budget:
        tp -= 128
    return tp, vmem_limit


def _dct_matmul(w_grp, patches, *, n_row_groups, tp, vmem_limit):
    m_rows, k_rows = w_grp.shape
    R_in, P = patches.shape
    grid = (n_row_groups, pl.cdiv(P, tp))
    out_rows = n_row_groups * m_rows
    return pl.pallas_call(
        _dct_kernel,
        out_shape=jax.ShapeDtypeStruct((out_rows, P), jnp.float32),
        grid_spec=pl.GridSpec(
            grid=grid,
            in_specs=[
                pl.BlockSpec((m_rows, k_rows), lambda i, j: (0, 0)),  # resident
                pl.BlockSpec((k_rows, tp), lambda i, j: (i, j)),      # patches
            ],
            out_specs=pl.BlockSpec((m_rows, tp), lambda i, j: (i, j)),
        ),
        compiler_params=pltpu.CompilerParams(
            dimension_semantics=("parallel", "parallel"),
            vmem_limit_bytes=vmem_limit,
        ),
        cost_estimate=pl.CostEstimate(
            flops=2 * m_rows * k_rows * P * n_row_groups,
            transcendentals=0,
            bytes_accessed=4 * (R_in * P + out_rows * P + m_rows * k_rows),
        ),
    )(w_grp, patches)


# -----------------------------------------------------------------------------
# Module-equivalent wrapper (jitted so the remaining glue fuses).
# -----------------------------------------------------------------------------
@partial(jax.jit, static_argnames=("N", "num_channels"))
def dct_recombination(x, N=8, num_channels=192):
    """x: (B, C, H, W) float32 NCHW.  Returns (B, C*N*N, H//N, W//N) for
    num_channels=192, or the 22/21/21-coefficient concat for num_channels=64."""
    B, C, H, W = x.shape
    assert H % N == 0 and W % N == 0
    Hb, Wb = H // N, W // N
    fre_len = N * N
    P = Hb * Wb
    in_pb = C * fre_len  # input patch rows per batch element

    w_flat = mk_coff(N=N).reshape(fre_len, fre_len)  # (64, 64) numpy f32

    # Per-batch-element weight (fixed / non-learnable, matches the torch conv).
    if num_channels == 64:
        # Kernel emits only the kept 22/21/21 coefficient rows directly.
        assert C >= 3 and fre_len >= 22, "64-channel mode assumes C=3, N=8"
        w_pb = np.zeros((64, in_pb), dtype=np.float32)
        w_pb[0:22, 0:fre_len] = w_flat[0:22]
        w_pb[22:43, fre_len:2 * fre_len] = w_flat[0:21]
        w_pb[43:64, 2 * fre_len:3 * fre_len] = w_flat[0:21]
        out_pb = 64
    elif num_channels == 192:
        w_pb = np.kron(np.eye(C, dtype=np.float32), w_flat)  # (C*64, C*64)
        out_pb = in_pb
    else:
        return None  # mirrors the torch module

    # Group Gb whole batch elements per grid step (block-diagonal weight) so
    # K = Gb*C*64 is ~192-256 and tiles/stores are large and lane-dense.
    gb = _largest_divisor_at_most(B, max(1, 256 // in_pb))
    k_rows = gb * in_pb
    m_rows = gb * out_pb
    w_grp = jnp.asarray(np.kron(np.eye(gb, dtype=np.float32), w_pb))

    # Element-major patches (one fused XLA relayout+cast pass):
    #   pe[(b*C+c)*64 + (i*N+j), hb*Wb + wb] = x[b, c, hb*N+i, wb*N+j]
    # TODO(synk): fuse this corner-turn into the kernel (natural-layout slab
    # reads + in-VMEM relayout or separable DCT) to cut HBM traffic ~2x.
    pe = (
        x.astype(jnp.float32)
        .reshape(B, C, Hb, N, Wb, N)
        .transpose(0, 1, 3, 5, 2, 4)
        .reshape(B * in_pb, P)
    )

    tp, vmem_limit = _pick_tile(P, k_rows, m_rows)
    coeffs = _dct_matmul(
        w_grp, pe, n_row_groups=B // gb, tp=tp, vmem_limit=vmem_limit
    )  # (B*out_pb, P)

    # Free reshape: rows already ordered (b, out-channel); columns are (hb, wb).
    return coeffs.reshape(B, out_pb, Hb, Wb)


# -----------------------------------------------------------------------------
# Reference (pure jnp) for sanity checking.
# -----------------------------------------------------------------------------
def _reference(x, N=8):
    B, C, H, W = x.shape
    Hb, Wb = H // N, W // N
    w = jnp.asarray(mk_coff(N=N))  # (64, 8, 8)
    blocks = x.reshape(B, C, Hb, N, Wb, N).transpose(0, 1, 2, 4, 3, 5)
    coeffs = jnp.einsum(
        "bchwij,kij->bchwk", blocks, w, precision=lax.Precision.HIGHEST
    )
    return coeffs.transpose(0, 1, 4, 2, 3).reshape(B, C * N * N, Hb, Wb)


if __name__ == "__main__":
    key = jax.random.PRNGKey(0)

    # Small shapes consistent with the module (in_channal=3, N=8 -> 4x4 blocks).
    B, C, H, W = 2, 3, 32, 32
    x = jax.random.normal(key, (B, C, H, W), dtype=jnp.float32)

    out = jax.block_until_ready(dct_recombination(x, N=8, num_channels=192))
    ref = jax.block_until_ready(_reference(x, N=8))
    assert out.shape == (B, C * 64, H // 8, W // 8), out.shape
    assert np.allclose(np.asarray(out), np.asarray(ref), atol=1e-3, rtol=1e-3)

    # 64-channel branch: kernel emits only the kept 22/21/21 coefficient rows.
    out64 = jax.block_until_ready(dct_recombination(x, N=8, num_channels=64))
    assert out64.shape == (B, 64, H // 8, W // 8), out64.shape
    ref64 = jnp.concatenate(
        (ref[:, 0:22], ref[:, 64:85], ref[:, 128:149]), axis=1
    )
    assert np.allclose(np.asarray(out64), np.asarray(ref64), atol=1e-3, rtol=1e-3)

    # Non-multiple-of-128 patch count (P = 12*12 = 144): exercises the
    # pad-free cdiv grid with a partial edge block.
    x2 = jax.random.normal(jax.random.PRNGKey(1), (1, 3, 96, 96), jnp.float32)
    out2 = jax.block_until_ready(dct_recombination(x2, N=8, num_channels=192))
    ref2 = jax.block_until_ready(_reference(x2, N=8))
    assert out2.shape == (1, 192, 12, 12), out2.shape
    assert np.allclose(np.asarray(out2), np.asarray(ref2), atol=1e-3, rtol=1e-3)

    print("KERNEL_OK")
</pallas_src>

<mosaic_0001>
module attributes {stable_mosaic.version = 11 : i64} {
  func.func @_dct_kernel(%arg0: i32, %arg1: i32, %arg2: memref<192x192xf32, #tpu.memory_space<vmem>>, %arg3: memref<192x16xf32, #tpu.memory_space<vmem>>, %arg4: memref<192x16xf32, #tpu.memory_space<vmem>>) attributes {dimension_semantics = [#tpu.dimension_semantics<parallel>, #tpu.dimension_semantics<parallel>], iteration_bounds = array<i64: 2, 1>, scalar_prefetch = 0 : i64, scratch_operands = 0 : i64, tpu.core_type = #tpu.core_type<tc>, window_params = [{pipeline_mode = #tpu.pipeline_mode<synchronous>, transform_indices = @transform_0, window_bounds = array<i64: 192, 192>}, {transform_indices = @transform_1, window_bounds = array<i64: 192, 16>}, {transform_indices = @transform_2, window_bounds = array<i64: 192, 16>}]} {
    %c0 = arith.constant 0 : index
    %c0_0 = arith.constant 0 : index
    %0 = vector.load %arg2[%c0, %c0_0] : memref<192x192xf32, #tpu.memory_space<vmem>>, vector<192x192xf32>
    %c0_1 = arith.constant 0 : index
    %c0_2 = arith.constant 0 : index
    %1 = vector.load %arg3[%c0_1, %c0_2] : memref<192x16xf32, #tpu.memory_space<vmem>>, vector<192x16xf32>
    %cst = arith.constant dense<0.000000e+00> : vector<192x16xf32>
    %2 = tpu.matmul %0, %1, %cst {dimension_numbers = #tpu.dot_dimension_numbers<[1], [0], [0], [1], [0, 0, 1, 1], [], []>, precision = #tpu.contract_precision<fp32>} : vector<192x192xf32>, vector<192x16xf32>, vector<192x16xf32> -> vector<192x16xf32>
    %c0_3 = arith.constant 0 : index
    %c0_4 = arith.constant 0 : index
    %3 = vector.load %arg4[%c0_3, %c0_4] : memref<192x16xf32, #tpu.memory_space<vmem>>, vector<192x16xf32>
    tpu.vector_store %arg4[%c0_3, %c0_4], %2 {strides = array<i32>} : memref<192x16xf32, #tpu.memory_space<vmem>>, vector<192x16xf32>,
    return
  }
  func.func @transform_0(%arg0: i32, %arg1: i32) -> (i32, i32) {
    %c0_i32 = arith.constant 0 : i32
    %c0_i32_0 = arith.constant 0 : i32
    %c0_i32_1 = arith.constant 0 : i32
    return %c0_i32, %c0_i32_0 : i32, i32
  }
  func.func @transform_1(%arg0: i32, %arg1: i32) -> (i32, i32) {
    %c0_i32 = arith.constant 0 : i32
    return %arg0, %arg1 : i32, i32
  }
  func.func @transform_2(%arg0: i32, %arg1: i32) -> (i32, i32) {
    %c0_i32 = arith.constant 0 : i32
    return %arg0, %arg1 : i32, i32
  }
}

</mosaic_0001>

<bundles_post_ra>
// kernel: dct_recombination.1
= control target key start
LH: loop header
LB: loop body
LE: loop exit
PB: predicated region body
PF: predicated region fallthrough
CT: control target
= control target key end

     0   :  { %s2546_s9 = smov 0   ;;  %s2548_s10 = smov 0   ;;  %s4202_s0 = inlined_call_operand.vmem [shape: f32[192,192], index: 0, kind: input, shape index: {}]   ;;  %s4203_s1 = inlined_call_operand.vmem [shape: f32[384,16], index: 1, kind: input, shape index: {}]   ;;  %s4204_s2 = inlined_call_operand.vmem [shape: f32[384,16], index: 2, kind: output, shape index: {}]  }
   0x1   :  { %s2550_s11 = smov 0  }
   0x2 LB: > { %s24_s12 = sadd.s32 1, %s2524_s10  ;;  %p2476_p0 = scmp.ge.s32.totalorder %s2528_s11, 1  ;;  %s2528_s11 = sphi %s2550_s11, %s12_s11   ;;  %s2524_s10 = sphi %s2548_s10, %s4781_s10   ;;  %s2520_s9 = sphi %s2546_s9, %s4780_s9  }
   0x3   : > { %p26_p1 = scmp.ge.s32.totalorder %s24_s12, 2  ;;  %p132_p2 = scmp.lt.s32.totalorder %s2528_s11, 3 }
   0x5   : > { %s4783_s12 = smov (%p26_p1, %s24_s12), 0  ;;  %p133_p3 = pnand %p2476_p0, %p132_p2 }
   0x7   : > { %136 = sbr.rel (%p133_p3) target bundleno = 558 (0x22e), region = 28 }
   0xc   : > { %s160_s13 = smul.u32 24, %s2520_s9  ;;  %v179_v0 = vld [vmem:[%s4202_s0 + $0x8] sm:$0xff]  ;;  %vm250_vm0 = vcmask 523264   ;;  %v4220_v1 = vmov 0.0   ;;  %vm2369_vm1 = vcmask 130048  }
   0xd   : > { %323 = vmatprep.subr.mxu0 %v4220_v1  ;;  %772 = vmatprep.subr.mxu1 %v4220_v1  ;;  %v2570_v2 = vsel %vm250_vm0, %v179_v0, 0 }
   0xe   : > { %p161_p4 = scmp.lt.s32.totalorder %s160_s13, 47  ;;  %v2573_v3 = vand.u32 4294901760, %v2570_v2 }
  0x10   : > { %4436 = vst [vmem:[#allocation2_spill] sm:$0xff] %v2573_v3  ;;  %s4785_s13 = smov (!%p161_p4, %s160_s13), 47  ;;  %957 = vmatprep.mubr.f32.mxu1 %v2573_v3 }
  0x11   : > { %s2477_s16 = sshll.u32 %s4785_s13, 3 }
  0x12   : > { %s2584_s19 = scalar_lea.vmem %s4203_s1, %s2477_s16  ;;  %s4120_s24 = scalar_lea.vmem %s4204_s2, %s2477_s16 }
  0x13   : > { %v241_v4 = vld [vmem:[%s2584_s19 + $0x78] sm:$0xff]  ;;  %v240_v5 = vld [vmem:[%s2584_s19 + $0x70] sm:$0xff]  ;;  %v239_v6 = vld [vmem:[%s2584_s19 + $0x68] sm:$0xff] }
  0x14   : > { %v2589_v7 = vand.u32 4294901760, %v241_v4  ;;  %v2591_v8 = vand.u32 4294901760, %v240_v5  ;;  %v2593_v9 = vand.u32 4294901760, %v239_v6  ;;  %v238_v10 = vld [vmem:[%s2584_s19 + $0x60] sm:$0xff]  ;;  %v237_v11 = vld [vmem:[%s2584_s19 + $0x58] sm:$0xff]  ;;  %v236_v12 = vld [vmem:[%s2584_s19 + $0x50] sm:$0xff] }
  0x15   : > { %v2598_v13 = vand.u32 4294901760, %v238_v10  ;;  %v2600_v14 = vand.u32 4294901760, %v237_v11  ;;  %v2602_v15 = vand.u32 4294901760, %v236_v12  ;;  %v235_v16 = vld [vmem:[%s2584_s19 + $0x48] sm:$0xff]  ;;  %v234_v17 = vld [vmem:[%s2584_s19 + $0x40] sm:$0xff]  ;;  %v233_v22 = vld [vmem:[%s2584_s19 + $0x38] sm:$0xff] }
  0x16   : > { %325 = vmatpush1.msra.mxu0 %v2589_v7  ;;  %v2608_v18 = vsub.f32 %v241_v4, %v2589_v7  ;;  %v2611_v19 = vsub.f32 %v240_v5, %v2591_v8  ;;  %v2613_v20 = vand.u32 4294901760, %v235_v16  ;;  %v2616_v21 = vsub.f32 %v239_v6, %v2593_v9  ;;  %v232_v29 = vld [vmem:[%s2584_s19 + $0x30] sm:$0xff]  ;;  %v231_v39 = vld [vmem:[%s2584_s19 + $0x28] sm:$0xff]  ;;  %v230_v44 = vld [vmem:[%s2584_s19 + $0x20] sm:$0xff] }
  0x17   : > { %326 = vmatprep.subr.mxu0 %v4220_v1  ;;  %v2621_v23 = vsub.f32 %v238_v10, %v2598_v13  ;;  %v2624_v24 = vsub.f32 %v237_v11, %v2600_v14  ;;  %v2630_v28 = vand.u32 4294901760, %v234_v17  ;;  %v2635_v31 = vand.u32 4294901760, %v233_v22  ;;  %v229_v52 = vld [vmem:[%s2584_s19 + $0x18] sm:$0xff]  ;;  %v228_v56 = vld [vmem:[%s2584_s19 + $0x10] sm:$0xff]  ;;  %v227_v62 = vld [vmem:[%s2584_s19 + $0x8] sm:$0xff] }
  0x18   : > { %4437 = vst [vmem:[#allocation3_spill] sm:$0xff] %v2613_v20  ;;  %328 = vmatpush1.msra.mxu0 %v2591_v8  ;;  %v4218_v25 = vand.u32 4294901760, %v2608_v18  ;;  %v4217_v26 = vand.u32 4294901760, %v2611_v19  ;;  %v4216_v27 = vand.u32 4294901760, %v2616_v21  ;;  %v2639_v33 = vsub.f32 %v236_v12, %v2602_v15  ;;  %v226_v10 = vld [vmem:[%s2584_s19] sm:$0xff] }
  0x19   : > { %329 = vmatprep.subr.mxu0 %v4220_v1  ;;  %v4215_v30 = vand.u32 4294901760, %v2621_v23  ;;  %v4214_v32 = vand.u32 4294901760, %v2624_v24  ;;  %v2652_v37 = vsub.f32 %v235_v16, %v2613_v20  ;;  %v2655_v38 = vand.u32 4294901760, %v232_v29 }
  0x1a   : > { %331 = vmatpush1.msra.mxu0 %v2593_v9  ;;  %v776_v34 = vsub.f32 %v2608_v18, %v4218_v25  ;;  %v783_v35 = vsub.f32 %v2611_v19, %v4217_v26  ;;  %v790_v36 = vsub.f32 %v2616_v21, %v4216_v27  ;;  %v4213_v43 = vand.u32 4294901760, %v2639_v33  ;;  %v244_v27 = vld [vmem:[%s2584_s19 + $0x90] sm:$0xff]  ;;  %v182_v25 = vld [vmem:[%s4202_s0 + $0x20] sm:$0xff] }
  0x1b   : > { %332 = vmatprep.subr.mxu0 %v4220_v1  ;;  %v797_v42 = vsub.f32 %v2621_v23, %v4215_v30  ;;  %v804_v45 = vsub.f32 %v2624_v24, %v4214_v32  ;;  %v2669_v46 = vsub.f32 %v234_v17, %v2630_v28  ;;  %v2672_v48 = vand.u32 4294901760, %v231_v39 }
  0x1c   : > { %334 = vmatpush1.msra.mxu0 %v2598_v13  ;;  %v777_v40 = vand.u32 4294901760, %v776_v34  ;;  %v784_v41 = vand.u32 4294901760, %v783_v35  ;;  %v791_v47 = vand.u32 4294901760, %v790_v36  ;;  %v4211_v49 = vand.u32 4294901760, %v2652_v37 }
  0x1d   : > { %335 = vmatprep.subr.mxu0 %v4220_v1  ;;  %v2676_v50 = vsub.f32 %v233_v22, %v2635_v31  ;;  %v2680_v51 = vand.u32 4294901760, %v230_v44  ;;  %v798_v53 = vand.u32 4294901760, %v797_v42  ;;  %v811_v54 = vsub.f32 %v2639_v33, %v4213_v43 }
  0x1e   : > { %337 = vmatpush1.msra.mxu0 %v2600_v14  ;;  %778 = vmatpush1.msra.mxu1 %v777_v40  ;;  %v4210_v55 = vand.u32 4294901760, %v2669_v46  ;;  %v2690_v57 = vsub.f32 %v232_v29, %v2655_v38  ;;  %v805_v58 = vand.u32 4294901760, %v804_v45  ;;  %v818_v59 = vsub.f32 %v2652_v37, %v4211_v49  ;;  %v249_v29 = vld [vmem:[%s2584_s19 + $0xb8] sm:$0xff]  ;;  %v180_v49 = vld [vmem:[%s4202_s0 + $0x10] sm:$0xff] }
  0x1f   : > { %338 = vmatprep.subr.mxu0 %v4220_v1  ;;  %779 = vmatprep.subr.mxu1 %v4220_v1  ;;  %4438 = vst [vmem:[#allocation4_spill] sm:$0xff] %v2680_v51  ;;  %v2698_v60 = vand.u32 4294901760, %v229_v52  ;;  %v4208_v61 = vand.u32 4294901760, %v2676_v50  ;;  %v2703_v63 = vsub.f32 %v231_v39, %v2672_v48  ;;  %v2707_v0 = vand.u32 4294901760, %v228_v56 }
  0x20   : > { %340 = vmatpush1.msra.mxu0 %v2602_v15  ;;  %785 = vmatpush1.msra.mxu1 %v784_v41  ;;  %v812_v4 = vand.u32 4294901760, %v811_v54  ;;  %v825_v5 = vsub.f32 %v2669_v46, %v4210_v55  ;;  %v4207_v6 = vand.u32 4294901760, %v2690_v57  ;;  %v2716_v11 = vsub.f32 %v230_v44, %v2680_v51  ;;  %v248_v41 = vld [vmem:[%s2584_s19 + $0xb0] sm:$0xff] }
  0x21   : > { %341 = vmatprep.subr.mxu0 %v4220_v1  ;;  %786 = vmatprep.subr.mxu1 %v4220_v1  ;;  %4439 = vst [vmem:[#allocation5_spill] sm:$0xff] %v2698_v60  ;;  %4440 = vst [vmem:[#allocation6_spill] sm:$0xff] %v2707_v0  ;;  %v2720_v12 = vand.u32 4294901760, %v227_v62  ;;  %v819_v16 = vand.u32 4294901760, %v818_v59  ;;  %v832_v17 = vsub.f32 %v2676_v50, %v4208_v61  ;;  %v4206_v22 = vand.u32 4294901760, %v2703_v63  ;;  %v183_v61 = vld [vmem:[%s4202_s0 + $0x28] sm:$0xff] }
  0x22   : > { %343 = vmatpush1.msra.mxu0 %v2613_v20  ;;  %792 = vmatpush1.msra.mxu1 %v791_v47  ;;  %v2729_v34 = vsub.f32 %v229_v52, %v2698_v60  ;;  %v2733_v35 = vand.u32 4294901760, %v226_v10  ;;  %v826_v36 = vand.u32 4294901760, %v825_v5  ;;  %v839_v39 = vsub.f32 %v2690_v57, %v4207_v6 }
  0x23   : > { %344 = vmatprep.subr.mxu0 %v4220_v1  ;;  %793 = vmatprep.subr.mxu1 %v4220_v1  ;;  %4441 = vst [vmem:[#allocation7_spill] sm:$0xff] %v2720_v12  ;;  %v4205_v40 = vand.u32 4294901760, %v2716_v11  ;;  %v2742_v42 = vsub.f32 %v228_v56, %v2707_v0  ;;  %v2746_v44 = vand.u32 4294901760, %v249_v29  ;;  %v833_v45 = vand.u32 4294901760, %v832_v17  ;;  %v181_v56 = vld [vmem:[%s4202_s0 + $0x18] sm:$0xff] }
  0x24   : > { %346 = vmatpush1.msra.mxu0 %v2630_v28  ;;  %799 = vmatpush1.msra.mxu1 %v798_v53  ;;  %4442 = vst [vmem:[#allocation8_spill] sm:$0xff] %v2733_v35  ;;  %v846_v47 = vsub.f32 %v2703_v63, %v4206_v22  ;;  %v4209_v52 = vand.u32 4294901760, %v2729_v34  ;;  %v247_v53 = vld [vmem:[%s2584_s19 + $0xa8] sm:$0xff]  ;;  %v2755_v54 = vsub.f32 %v227_v62, %v2720_v12  ;;  %v840_v59 = vand.u32 4294901760, %v839_v39  ;;  %v246_v22 = vld [vmem:[%s2584_s19 + $0xa0] sm:$0xff] }
  0x25   : > { %347 = vmatprep.subr.mxu0 %v4220_v1  ;;  %800 = vmatprep.subr.mxu1 %v4220_v1  ;;  %4443 = vst [vmem:[#allocation9_spill] sm:$0xff] %v2742_v42  ;;  %4444 = vst [vmem:[#allocation10_spill] sm:$0xff] %v2746_v44  ;;  %v853_v62 = vsub.f32 %v2716_v11, %v4205_v40  ;;  %v2770_v5 = vsub.f32 %v226_v10, %v2733_v35  ;;  %v2777_v17 = vand.u32 4294901760, %v247_v53 }
  0x26   : > { %349 = vmatpush1.msra.mxu0 %v2635_v31  ;;  %806 = vmatpush1.msra.mxu1 %v805_v58  ;;  %4445 = vst [vmem:[#allocation11_spill] sm:$0xff] %v2755_v54  ;;  %v2762_v58 = vand.u32 4294901760, %v248_v41  ;;  %v847_v39 = vand.u32 4294901760, %v846_v47  ;;  %v860_v10 = vsub.f32 %v2729_v34, %v4209_v52  ;;  %v4219_v40 = vand.u32 4294901760, %v2755_v54  ;;  %v245_v52 = vld [vmem:[%s2584_s19 + $0x98] sm:$0xff] }
  0x27   : > { %350 = vmatprep.subr.mxu0 %v4220_v1  ;;  %807 = vmatprep.subr.mxu1 %v4220_v1  ;;  %4447 = vst [vmem:[#allocation13_spill] sm:$0xff] %v2770_v5  ;;  %4448 = vst [vmem:[#allocation14_spill] sm:$0xff] %v2777_v17  ;;  %v2787_v6 = vsub.f32 %v249_v29, %v2746_v44  ;;  %v854_v47 = vand.u32 4294901760, %v853_v62  ;;  %v4228_v29 = vand.u32 4294901760, %v2770_v5  ;;  %v2813_v62 = vand.u32 4294901760, %v246_v22 }
  0x28   : > { %352 = vmatpush1.msra.mxu0 %v2655_v38  ;;  %813 = vmatpush1.msra.mxu1 %v812_v4  ;;  %4446 = vst [vmem:[#allocation12_spill] sm:$0xff] %v2762_v58  ;;  %v4212_v4 = vand.u32 4294901760, %v2742_v42  ;;  %v2803_v55 = vsub.f32 %v248_v41, %v2762_v58  ;;  %v258_v43 = vsel %vm250_vm0, %v183_v61, 0  ;;  %v861_v41 = vand.u32 4294901760, %v860_v10 }
  0x29   : > { %353 = vmatprep.subr.mxu0 %v4220_v1  ;;  %814 = vmatprep.subr.mxu1 %v4220_v1  ;;  %4449 = vst [vmem:[#allocation15_spill] sm:$0xff] %v2787_v6  ;;  %4452 = vst [vmem:[#allocation18_spill] sm:$0xff] %v2813_v62  ;;  %v874_v32 = vsub.f32 %v2755_v54, %v4219_v40  ;;  %v2825_v26 = vsub.f32 %v247_v53, %v2777_v17  ;;  %v2832_v61 = vand.u32 4294901760, %v245_v52  ;;  %v4459_v54 = vmov 0.0  }
  0x2a   : > { %355 = vmatpush1.msra.mxu0 %v2672_v48  ;;  %820 = vmatpush1.msra.mxu1 %v819_v16  ;;  %v178_v16 = vld [vmem:[%s4202_s0] sm:$0xff]  ;;  %4451 = vst [vmem:[#allocation17_spill] sm:$0xff] %v2803_v55  ;;  %v2837_v10 = vand.u32 4294901760, %v180_v49  ;;  %v881_v30 = vsub.f32 %v2770_v5, %v4228_v29 }
  0x2b   : > { %356 = vmatprep.subr.mxu0 %v4220_v1  ;;  %821 = vmatprep.subr.mxu1 %v4220_v1  ;;  %4454 = vst [vmem:[#allocation20_spill] sm:$0xff] %v2825_v26  ;;  %4455 = vst [vmem:[#allocation21_spill] sm:$0xff] %v2832_v61  ;;  %v875_v29 = vand.u32 4294901760, %v874_v32  ;;  %v242_v5 = vld [vmem:[%s2584_s19 + $0x80] sm:$0xff] }
  0x2c   : > { %358 = vmatpush1.msra.mxu0 %v2680_v51  ;;  %827 = vmatpush1.msra.mxu1 %v826_v36  ;;  %v255_v36 = vsel %vm250_vm0, %v181_v56, 0  ;;  %v867_v56 = vsub.f32 %v2742_v42, %v4212_v4  ;;  %4457 = vst [vmem:[#allocation23_spill] sm:$0xff] %v2837_v10  ;;  %v2878_v32 = vsub.f32 %v180_v49, %v2837_v10  ;;  %v2893_v49 = vand.u32 4294901760, %v242_v5  ;;  %v187_v42 = vld [vmem:[%s4202_s0 + $0x48] sm:$0xff] }
  0x2d   : > { %359 = vmatprep.subr.mxu0 %v4220_v1  ;;  %828 = vmatprep.subr.mxu1 %v4220_v1  ;;  %v2815_v4 = vand.u32 4294901760, %v255_v36 }
  0x2e   : > { %361 = vmatpush1.msra.mxu0 %v2698_v60  ;;  %834 = vmatpush1.msra.mxu1 %v833_v45  ;;  %v2794_v45 = vand.u32 4294901760, %v178_v16  ;;  %v868_v53 = vand.u32 4294901760, %v867_v56  ;;  %v2857_v56 = vand.u32 4294901760, %v258_v43  ;;  %4467 = vst [vmem:[#allocation31_spill] sm:$0xff] %v2878_v32  ;;  %4470 = vst [vmem:[#allocation33_spill] sm:$0xff] %v2893_v49 }
  0x2f   : > { %362 = vmatprep.subr.mxu0 %v4220_v1  ;;  %835 = vmatprep.subr.mxu1 %v4220_v1  ;;  %4453 = vst [vmem:[#allocation19_spill] sm:$0xff] %v2815_v4 }
  0x30   : > { %4450 = vst [vmem:[#allocation16_spill] sm:$0xff] %v2794_v45  ;;  %364 = vmatpush1.msra.mxu0 %v2707_v0  ;;  %841 = vmatpush1.msra.mxu1 %v840_v59  ;;  %v185_v59 = vld [vmem:[%s4202_s0 + $0x38] sm:$0xff]  ;;  %4462 = vst [vmem:[#allocation27_spill] sm:$0xff] %v2857_v56  ;;  %v2868_v0 = vsub.f32 %v255_v36, %v2815_v4  ;;  %v4469_v36 = vand.u32 4294901760, %v2803_v55 }
  0x31   : > { %365 = vmatprep.subr.mxu0 %v4220_v1  ;;  %842 = vmatprep.subr.mxu1 %v4220_v1  ;;  %v261_v40 = vsel %vm250_vm0, %v185_v59, 0  ;;  %v2852_v59 = vand.u32 4294901760, %v244_v27 }
  0x32   : > { %367 = vmatpush1.msra.mxu0 %v2720_v12  ;;  %848 = vmatpush1.msra.mxu1 %v847_v39  ;;  %v2835_v39 = vsub.f32 %v178_v16, %v2794_v45  ;;  %v243_v12 = vld [vmem:[%s2584_s19 + $0x88] sm:$0xff]  ;;  %v2848_v16 = vsub.f32 %v2570_v2, %v2573_v3  ;;  %v4464_v2 = vand.u32 4294901760, %v2787_v6  ;;  %4465 = vst [vmem:[#allocation29_spill] sm:$0xff] %v2868_v0 }
  0x33   : > { %368 = vmatprep.subr.mxu0 %v4220_v1  ;;  %849 = vmatprep.subr.mxu1 %v4220_v1  ;;  %4460 = vst [vmem:[#allocation25_spill] sm:$0xff] %v2852_v59  ;;  %v911_v3 = vsub.f32 %v2803_v55, %v4469_v36  ;;  %v2900_v36 = vsub.f32 %v258_v43, %v2857_v56  ;;  %v264_v43 = vsel %vm250_vm0, %v187_v42, 0 }
  0x34   : > { %4456 = vst [vmem:[#allocation22_spill] sm:$0xff] %v2835_v39  ;;  %370 = vmatpush1.msra.mxu0 %v2733_v35  ;;  %855 = vmatpush1.msra.mxu1 %v854_v47  ;;  %4458 = vst [vmem:[#allocation24_spill] sm:$0xff] %v2848_v16  ;;  %v2855_v47 = vsub.f32 %v246_v22, %v2813_v62  ;;  %v2859_v35 = vand.u32 4294901760, %v182_v25  ;;  %v904_v1 = vsub.f32 %v2787_v6, %v4464_v2 }
  0x35   : > { %387 = vmatprep.subr.mxu0 %v4459_v54  ;;  %856 = vmatprep.subr.mxu1 %v4459_v54  ;;  %v2872_v22 = vand.u32 4294901760, %v243_v12  ;;  %v882_v2 = vand.u32 4294901760, %v881_v30  ;;  %4472 = vst [vmem:[#allocation35_spill] sm:$0xff] %v2900_v36  ;;  %v4479_v60 = vand.u32 4294901760, %v2835_v39  ;;  %v2943_v42 = vsub.f32 %v242_v5, %v2893_v49 }
  0x36   : > { %4461 = vst [vmem:[#allocation26_spill] sm:$0xff] %v2855_v47  ;;  %4463 = vst [vmem:[#allocation28_spill] sm:$0xff] %v2859_v35  ;;  %389 = vmatpush2.msra.mxu0 %v2746_v44  ;;  %862 = vmatpush1.msra.mxu1 %v861_v41  ;;  %v2875_v44 = vsub.f32 %v245_v52, %v2832_v61  ;;  %v2880_v41 = vand.u32 4294901760, %v261_v40  ;;  %v184_v52 = vld [vmem:[%s4202_s0 + $0x30] sm:$0xff]  ;;  %v905_v6 = vand.u32 4294901760, %v904_v1 }
  0x37   : > { %390 = vmatprep.subr.mxu0 %v4459_v54  ;;  %863 = vmatprep.subr.mxu1 %v4459_v54  ;;  %4466 = vst [vmem:[#allocation30_spill] sm:$0xff] %v2872_v22  ;;  %v2920_v1 = vand.u32 4294901760, %v184_v52 }
  0x38   : > { %4468 = vst [vmem:[#allocation32_spill] sm:$0xff] %v2880_v41  ;;  %392 = vmatpush2.msra.mxu0 %v2762_v58  ;;  %869 = vmatpush1.msra.mxu1 %v868_v53  ;;  %v2897_v53 = vsub.f32 %v244_v27, %v2852_v59  ;;  %v4473_v58 = vand.u32 4294901760, %v2825_v26  ;;  %v2911_v27 = vsub.f32 %v182_v25, %v2859_v35  ;;  %v4476_v25 = vand.u32 4294901760, %v2848_v16 }
  0x39   : > { %393 = vmatprep.subr.mxu0 %v4459_v54  ;;  %870 = vmatprep.subr.mxu1 %v4459_v54  ;;  %4475 = vst [vmem:[#allocation37_spill] sm:$0xff] %v2920_v1  ;;  %v4481_v5 = vand.u32 4294901760, %v2875_v44 }
  0x3a   : > { %4471 = vst [vmem:[#allocation34_spill] sm:$0xff] %v2897_v53  ;;  %395 = vmatpush2.msra.mxu0 %v2777_v17  ;;  %876 = vmatpush1.msra.mxu1 %v875_v29  ;;  %v918_v55 = vsub.f32 %v2825_v26, %v4473_v58  ;;  %v2918_v29 = vsub.f32 %v243_v12, %v2872_v22  ;;  %v912_v58 = vand.u32 4294901760, %v911_v3  ;;  %v189_v12 = vld [vmem:[%s4202_s0 + $0x58] sm:$0xff]  ;;  %v4480_v26 = vand.u32 4294901760, %v2868_v0 }
  0x3b   : > { %396 = vmatprep.subr.mxu0 %v4459_v54  ;;  %877 = vmatprep.subr.mxu1 %v4459_v54  ;;  %v414_v30 = vsub.f32 %v2848_v16, %v4476_v25  ;;  %v2927_v17 = vsub.f32 %v261_v40, %v2880_v41  ;;  %v420_v25 = vsub.f32 %v2835_v39, %v4479_v60  ;;  %v186_v16 = vld [vmem:[%s4202_s0 + $0x40] sm:$0xff]  ;;  %v4483_v60 = vand.u32 4294901760, %v2878_v32 }
  0x3c   : > { %4474 = vst [vmem:[#allocation36_spill] sm:$0xff] %v2918_v29  ;;  %398 = vmatpush2.msra.mxu0 %v2813_v62  ;;  %883 = vmatpush1.msra.mxu1 %v882_v2  ;;  %v4478_v2 = vand.u32 4294901760, %v2855_v47  ;;  %v919_v62 = vand.u32 4294901760, %v918_v55  ;;  %v932_v40 = vsub.f32 %v2875_v44, %v4481_v5  ;;  %v267_v55 = vsel %vm250_vm0, %v189_v12, 0 }
  0x3d   : > { %4477 = vst [vmem:[#allocation38_spill] sm:$0xff] %v2927_v17  ;;  %399 = vmatprep.subr.mxu0 %v4459_v54  ;;  %900 = vmatprep.subr.mxu1 %v4459_v54  ;;  %v421_v39 = vand.u32 4294901760, %v420_v25  ;;  %v4486_v12 = vand.u32 4294901760, %v2897_v53  ;;  %v2986_v25 = vand.u32 4294901760, %v267_v55 }
  0x3e   : > { %v925_v3 = vsub.f32 %v2855_v47, %v4478_v2  ;;  %401 = vmatpush2.msra.mxu0 %v2832_v61  ;;  %906 = vmatpush2.msra.mxu1 %v905_v6  ;;  %v429_v2 = vsub.f32 %v2868_v0, %v4480_v26  ;;  %v2960_v6 = vand.u32 4294901760, %v264_v43  ;;  %v415_v26 = vand.u32 4294901760, %v414_v30 }
  0x3f   : > { %402 = vmatprep.subr.mxu0 %v4459_v54  ;;  %907 = vmatprep.subr.mxu1 %v4459_v54  ;;  %v435_v47 = vsub.f32 %v2878_v32, %v4483_v60  ;;  %v2968_v0 = vsub.f32 %v184_v52, %v2920_v1  ;;  %v2970_v61 = vand.u32 4294901760, %v186_v16  ;;  %v191_v60 = vld [vmem:[%s4202_s0 + $0x68] sm:$0xff]  ;;  %v4487_v32 = vand.u32 4294901760, %v2900_v36  ;;  %4488 = vst [vmem:[#allocation42_spill] sm:$0xff] %v2986_v25 }
  0x40   : > { %4482 = vst [vmem:[#allocation39_spill] sm:$0xff] %v2960_v6  ;;  %404 = vmatpush2.msra.mxu0 %v2852_v59  ;;  %913 = vmatpush2.msra.mxu1 %v912_v58  ;;  %v926_v5 = vand.u32 4294901760, %v925_v3  ;;  %v939_v58 = vsub.f32 %v2897_v53, %v4486_v12  ;;  %v430_v52 = vand.u32 4294901760, %v429_v2  ;;  %v188_v12 = vld [vmem:[%s4202_s0 + $0x50] sm:$0xff]  ;;  %v933_v30 = vand.u32 4294901760, %v932_v40 }
  0x41   : > { %4484 = vst [vmem:[#allocation40_spill] sm:$0xff] %v2968_v0  ;;  %4485 = vst [vmem:[#allocation41_spill] sm:$0xff] %v2970_v61  ;;  %405 = vmatprep.subr.mxu0 %v4459_v54  ;;  %914 = vmatprep.subr.mxu1 %v4459_v54  ;;  %v444_v59 = vsub.f32 %v2900_v36, %v4487_v32  ;;  %v436_v32 = vand.u32 4294901760, %v435_v47  ;;  %v4491_v3 = vand.u32 4294901760, %v2911_v27  ;;  %v270_v40 = vsel %vm250_vm0, %v191_v60, 0 }
  0x42   : > { %407 = vmatpush2.msra.mxu0 %v2872_v22  ;;  %920 = vmatpush2.msra.mxu1 %v919_v62  ;;  %v4489_v62 = vand.u32 4294901760, %v2918_v29  ;;  %v2997_v22 = vsub.f32 %v264_v43, %v2960_v6  ;;  %v3004_v53 = vsub.f32 %v186_v16, %v2970_v61  ;;  %v940_v43 = vand.u32 4294901760, %v939_v58 }
  0x43   : > { %408 = vmatprep.subr.mxu0 %v4459_v54  ;;  %921 = vmatprep.subr.mxu1 %v4459_v54  ;;  %v450_v36 = vsub.f32 %v2911_v27, %v4491_v3  ;;  %v445_v16 = vand.u32 4294901760, %v444_v59  ;;  %v4495_v60 = vand.u32 4294901760, %v2927_v17 }
  0x44   : > { %v946_v2 = vsub.f32 %v2918_v29, %v4489_v62  ;;  %4490 = vst [vmem:[#allocation43_spill] sm:$0xff] %v2997_v22  ;;  %410 = vmatpush2.msra.mxu0 %v2893_v49  ;;  %416 = vmatprep.mubr.f32.mxu0 %v415_v26  ;;  %4492 = vst [vmem:[#allocation44_spill] sm:$0xff] %v3004_v53  ;;  %v193_v62 = vld [vmem:[%s4202_s0 + $0x78] sm:$0xff]  ;;  %v4493_v49 = vand.u32 4294901760, %v2943_v42  ;;  %v3014_v29 = vand.u32 4294901760, %v188_v12  ;;  %v3028_v26 = vand.u32 4294901760, %v270_v40 }
  0x45   : > { %927 = vmatpush2.msra.mxu1 %v926_v5  ;;  %422 = vmatmul.mubr.f32.vlgmr.msra.gmra.mxu0 %v421_v39  ;;  %v459_v3 = vsub.f32 %v2927_v17, %v4495_v60  ;;  %v3021_v5 = vsub.f32 %v267_v55, %v2986_v25  ;;  %v190_v39 = vld [vmem:[%s4202_s0 + $0x60] sm:$0xff]  ;;  %v273_v59 = vsel %vm250_vm0, %v193_v62, 0  ;;  %v451_v55 = vand.u32 4294901760, %v450_v36  ;;  %v195_v62 = vld [vmem:[%s4202_s0 + $0x88] sm:$0xff] }
  0x46   : > { %v953_v47 = vsub.f32 %v2943_v42, %v4493_v49  ;;  %4494 = vst [vmem:[#allocation45_spill] sm:$0xff] %v3014_v29  ;;  %928 = vmatprep.subr.mxu1 %v4459_v54  ;;  %431 = vmatprep.mubr.f32.mxu0 %v430_v52  ;;  %v947_v49 = vand.u32 4294901760, %v946_v2  ;;  %4497 = vst [vmem:[#allocation47_spill] sm:$0xff] %v3028_v26  ;;  %v3038_v58 = vsub.f32 %v188_v12, %v3014_v29 }
  0x47   : > { %4496 = vst [vmem:[#allocation46_spill] sm:$0xff] %v3021_v5  ;;  %934 = vmatpush2.msra.mxu1 %v933_v30  ;;  %1125 = vmatprep.subr.mxu0 %v4459_v54  ;;  %v4498_v30 = vand.u32 4294901760, %v2968_v0  ;;  %v3040_v17 = vand.u32 4294901760, %v190_v39  ;;  %v460_v12 = vand.u32 4294901760, %v459_v3  ;;  %v3057_v52 = vsub.f32 %v270_v40, %v3028_v26  ;;  %v197_v3 = vld [vmem:[%s4202_s0 + $0x98] sm:$0xff] }
  0x48   : > { %935 = vmatprep.subr.mxu1 %v4459_v54  ;;  %1128 = vmatpush1.msra.mxu0 %v2608_v18  ;;  %v954_v60 = vand.u32 4294901760, %v953_v47  ;;  %4499 = vst [vmem:[#allocation48_spill] sm:$0xff] %v3038_v58  ;;  %v4502_v47 = vand.u32 4294901760, %v2997_v22  ;;  %v279_v40 = vsel %vm250_vm0, %v197_v3, 0 }
  0x49   : > { %941 = vmatpush2.msra.mxu1 %v940_v43  ;;  %437 = vmatmul.mubr.f32.gmra.mxu0 %v436_v32  ;;  %v465_v2 = vsub.f32 %v2968_v0, %v4498_v30  ;;  %4500 = vst [vmem:[#allocation49_spill] sm:$0xff] %v3040_v17  ;;  %v3047_v32 = vand.u32 4294901760, %v273_v59  ;;  %v192_v43 = vld [vmem:[%s4202_s0 + $0x70] sm:$0xff] }
  0x4a   : > { %942 = vmatprep.subr.mxu1 %v4459_v54  ;;  %446 = vmatprep.mubr.f32.mxu0 %v445_v16  ;;  %v474_v30 = vsub.f32 %v2997_v22, %v4502_v47  ;;  %v4503_v16 = vand.u32 4294901760, %v3004_v53  ;;  %v3070_v22 = vsub.f32 %v190_v39, %v3040_v17  ;;  %v3072_v0 = vand.u32 4294901760, %v192_v43 }
  0x4b   : > { %4501 = vst [vmem:[#allocation50_spill] sm:$0xff] %v3047_v32  ;;  %948 = vmatpush2.msra.mxu1 %v947_v49  ;;  %1129 = vmatprep.subr.mxu0 %v4459_v54  ;;  %v276_v49 = vsel %vm250_vm0, %v195_v62, 0  ;;  %v466_v47 = vand.u32 4294901760, %v465_v2  ;;  %v4506_v62 = vand.u32 4294901760, %v3021_v5 }
  0x4c   : > { %949 = vmatprep.subr.mxu1 %v4459_v54  ;;  %1132 = vmatpush1.msra.mxu0 %v2611_v19  ;;  %v480_v36 = vsub.f32 %v3004_v53, %v4503_v16  ;;  %4504 = vst [vmem:[#allocation51_spill] sm:$0xff] %v3070_v22  ;;  %4505 = vst [vmem:[#allocation52_spill] sm:$0xff] %v3072_v0  ;;  %v3080_v53 = vsub.f32 %v273_v59, %v3047_v32  ;;  %v475_v39 = vand.u32 4294901760, %v474_v30 }
  0x4d   : > { %955 = vmatpush2.msra.mxu1 %v954_v60  ;;  %452 = vmatmul.mubr.f32.gmra.mxu0 %v451_v55  ;;  %v489_v16 = vsub.f32 %v3021_v5, %v4506_v62  ;;  %v194_v55 = vld [vmem:[%s4202_s0 + $0x80] sm:$0xff]  ;;  %v3087_v2 = vand.u32 4294901760, %v276_v49  ;;  %v199_v62 = vld [vmem:[%s4202_s0 + $0xa8] sm:$0xff]  ;;  %v3101_v3 = vsub.f32 %v192_v43, %v3072_v0  ;;  %v4513_v43 = vand.u32 4294901760, %v3057_v52 }
  0x4e   : > { %959 = vmatmul.mubr.f32.vlgmr.msra.gmra.mxu1 %v2794_v45  ;;  %1454 = vmatprep.subr.mxu1 %v4459_v54  ;;  %4507 = vst [vmem:[#allocation53_spill] sm:$0xff] %v3080_v53  ;;  %v481_v59 = vand.u32 4294901760, %v480_v36  ;;  %v196_v36 = vld [vmem:[%s4202_s0 + $0x90] sm:$0xff]  ;;  %v3111_v45 = vand.u32 4294901760, %v279_v40  ;;  %v282_v5 = vsel %vm250_vm0, %v199_v62, 0  ;;  %v201_v62 = vld [vmem:[%s4202_s0 + $0xb8] sm:$0xff] }
  0x4f   : > { %1456 = vmatpush1.msra.mxu1 %v2589_v7  ;;  %461 = vmatprep.mubr.f32.mxu0 %v460_v12  ;;  %4508 = vst [vmem:[#allocation54_spill] sm:$0xff] %v3087_v2  ;;  %v4509_v12 = vand.u32 4294901760, %v3038_v58  ;;  %4510 = vst [vmem:[#allocation55_spill] sm:$0xff] %v3101_v3  ;;  %v504_v60 = vsub.f32 %v3057_v52, %v4513_v43  ;;  %v4520_v43 = vand.u32 4294901760, %v3080_v53 }
  0x50   : > { %964 = vmatprep.mubr.f32.mxu1 %v2815_v4  ;;  %1457 = vmatprep.subr.mxu1 %v4459_v54  ;;  %v3103_v4 = vand.u32 4294901760, %v194_v55  ;;  %4512 = vst [vmem:[#allocation57_spill] sm:$0xff] %v3111_v45 }
  0x51   : > { %467 = vmatmul.mubr.f32.gmra.mxu0 %v466_v47  ;;  %1459 = vmatpush1.msra.mxu1 %v2591_v8  ;;  %v495_v30 = vsub.f32 %v3038_v58, %v4509_v12  ;;  %v490_v12 = vand.u32 4294901760, %v489_v16  ;;  %v3118_v58 = vsub.f32 %v276_v49, %v3087_v2  ;;  %v3123_v47 = vand.u32 4294901760, %v196_v36 }
  0x52   : > { %4511 = vst [vmem:[#allocation56_spill] sm:$0xff] %v3103_v4  ;;  %966 = vmatmul.mubr.f32.gmra.mxu1 %v2837_v10  ;;  %1133 = vmatprep.subr.mxu0 %v4459_v54  ;;  %v4516_v16 = vand.u32 4294901760, %v3070_v22  ;;  %v3131_v49 = vsub.f32 %v194_v55, %v3103_v4  ;;  %v505_v55 = vand.u32 4294901760, %v504_v60  ;;  %v519_v10 = vsub.f32 %v3080_v53, %v4520_v43  ;;  %v203_v53 = vld [vmem:[%s4202_s0 + $0xc8] sm:$0xff] }
  0x53   : > { %476 = vmatprep.mubr.f32.mxu0 %v475_v39  ;;  %971 = vmatprep.mubr.f32.mxu1 %v2857_v56  ;;  %4514 = vst [vmem:[#allocation58_spill] sm:$0xff] %v3118_v58  ;;  %4515 = vst [vmem:[#allocation59_spill] sm:$0xff] %v3123_v47  ;;  %v496_v39 = vand.u32 4294901760, %v495_v30  ;;  %v3141_v30 = vand.u32 4294901760, %v282_v5  ;;  %v4522_v60 = vand.u32 4294901760, %v3101_v3 }
  0x54   : > { %1136 = vmatpush1.msra.mxu0 %v2616_v21  ;;  %1460 = vmatprep.subr.mxu1 %v4459_v54  ;;  %v510_v56 = vsub.f32 %v3070_v22, %v4516_v16  ;;  %4517 = vst [vmem:[#allocation60_spill] sm:$0xff] %v3131_v49  ;;  %v198_v16 = vld [vmem:[%s4202_s0 + $0xa0] sm:$0xff]  ;;  %v285_v22 = vsel %vm250_vm0, %v201_v62, 0  ;;  %v520_v62 = vand.u32 4294901760, %v519_v10  ;;  %v4527_v10 = vand.u32 4294901760, %v3131_v49 }
  0x55   : > { %482 = vmatmul.mubr.f32.gmra.mxu0 %v481_v59  ;;  %1462 = vmatpush1.msra.mxu1 %v2593_v9  ;;  %v3139_v59 = vsub.f32 %v279_v40, %v3111_v45  ;;  %4519 = vst [vmem:[#allocation62_spill] sm:$0xff] %v3141_v30  ;;  %v3154_v40 = vsub.f32 %v196_v36, %v3123_v47  ;;  %v288_v36 = vsel %vm250_vm0, %v203_v53, 0 }
  0x56   : > { %973 = vmatmul.mubr.f32.gmra.mxu1 %v2859_v35  ;;  %1137 = vmatprep.subr.mxu0 %v4459_v54  ;;  %v3162_v35 = vand.u32 4294901760, %v198_v16 }
  0x57   : > { %4518 = vst [vmem:[#allocation61_spill] sm:$0xff] %v3139_v59  ;;  %491 = vmatprep.mubr.f32.mxu0 %v490_v12  ;;  %978 = vmatprep.mubr.f32.mxu1 %v2880_v41  ;;  %4521 = vst [vmem:[#allocation63_spill] sm:$0xff] %v3154_v40  ;;  %v511_v12 = vand.u32 4294901760, %v510_v56  ;;  %v525_v41 = vsub.f32 %v3101_v3, %v4522_v60  ;;  %v3171_v56 = vsub.f32 %v282_v5, %v3141_v30  ;;  %v205_v3 = vld [vmem:[%s4202_s0 + $0xd8] sm:$0xff] }
  0x58   : > { %1140 = vmatpush1.msra.mxu0 %v2621_v23  ;;  %1463 = vmatprep.subr.mxu1 %v4459_v54  ;;  %4523 = vst [vmem:[#allocation64_spill] sm:$0xff] %v3162_v35  ;;  %v4525_v60 = vand.u32 4294901760, %v3118_v58  ;;  %v4530_v53 = vand.u32 4294901760, %v3139_v59 }
  0x59   : > { %497 = vmatmul.mubr.f32.gmra.mxu0 %v496_v39  ;;  %1465 = vmatpush1.msra.mxu1 %v2598_v13  ;;  %4524 = vst [vmem:[#allocation65_spill] sm:$0xff] %v3171_v56  ;;  %v200_v39 = vld [vmem:[%s4202_s0 + $0xb0] sm:$0xff] }
  0x5a   : > { %980 = vmatmul.mubr.f32.gmra.mxu1 %v2920_v1  ;;  %1141 = vmatprep.subr.mxu0 %v4459_v54  ;;  %v534_v43 = vsub.f32 %v3118_v58, %v4525_v60  ;;  %v3180_v1 = vand.u32 4294901760, %v285_v22  ;;  %v3191_v60 = vsub.f32 %v198_v16, %v3162_v35  ;;  %v3193_v58 = vand.u32 4294901760, %v200_v39  ;;  %v202_v16 = vld [vmem:[%s4202_s0 + $0xc0] sm:$0xff] }
  0x5b   : > { %506 = vmatprep.mubr.f32.mxu0 %v505_v55  ;;  %985 = vmatprep.mubr.f32.mxu1 %v2960_v6  ;;  %v526_v55 = vand.u32 4294901760, %v525_v41  ;;  %v540_v6 = vsub.f32 %v3131_v49, %v4527_v10  ;;  %v549_v41 = vsub.f32 %v3139_v59, %v4530_v53  ;;  %v4532_v53 = vand.u32 4294901760, %v3154_v40 }
  0x5c   : > { %4526 = vst [vmem:[#allocation66_spill] sm:$0xff] %v3180_v1  ;;  %1144 = vmatpush1.msra.mxu0 %v2624_v24  ;;  %1466 = vmatprep.subr.mxu1 %v4459_v54  ;;  %4528 = vst [vmem:[#allocation67_spill] sm:$0xff] %v3191_v60  ;;  %v535_v10 = vand.u32 4294901760, %v534_v43  ;;  %v3209_v5 = vsub.f32 %v285_v22, %v3180_v1  ;;  %v291_v59 = vsel %vm250_vm0, %v205_v3, 0  ;;  %v3227_v49 = vand.u32 4294901760, %v202_v16 }
  0x5d   : > { %512 = vmatmul.mubr.f32.gmra.mxu0 %v511_v12  ;;  %1468 = vmatpush1.msra.mxu1 %v2600_v14  ;;  %4529 = vst [vmem:[#allocation68_spill] sm:$0xff] %v3193_v58  ;;  %v555_v12 = vsub.f32 %v3154_v40, %v4532_v53  ;;  %v541_v22 = vand.u32 4294901760, %v540_v6  ;;  %v550_v3 = vand.u32 4294901760, %v549_v41  ;;  %v4535_v53 = vand.u32 4294901760, %v3171_v56  ;;  %v204_v6 = vld [vmem:[%s4202_s0 + $0xd0] sm:$0xff] }
  0x5e   : > { %987 = vmatmul.mubr.f32.gmra.mxu1 %v2970_v61  ;;  %1145 = vmatprep.subr.mxu0 %v4459_v54  ;;  %v3211_v61 = vand.u32 4294901760, %v288_v36  ;;  %4534 = vst [vmem:[#allocation71_spill] sm:$0xff] %v3227_v49  ;;  %v3242_v43 = vand.u32 4294901760, %v291_v59 }
  0x5f   : > { %521 = vmatprep.mubr.f32.mxu0 %v520_v62  ;;  %992 = vmatprep.mubr.f32.mxu1 %v2986_v25  ;;  %v207_v62 = vld [vmem:[%s4202_s0 + $0xe8] sm:$0xff]  ;;  %v3225_v25 = vsub.f32 %v200_v39, %v3193_v58  ;;  %v564_v40 = vsub.f32 %v3171_v56, %v4535_v53  ;;  %v556_v53 = vand.u32 4294901760, %v555_v12  ;;  %v4538_v39 = vand.u32 4294901760, %v3191_v60  ;;  %v206_v12 = vld [vmem:[%s4202_s0 + $0xe0] sm:$0xff] }
  0x60   : > { %4531 = vst [vmem:[#allocation69_spill] sm:$0xff] %v3211_v61  ;;  %1148 = vmatpush1.msra.mxu0 %v2639_v33  ;;  %1469 = vmatprep.subr.mxu1 %v4459_v54  ;;  %4537 = vst [vmem:[#allocation73_spill] sm:$0xff] %v3242_v43  ;;  %v294_v41 = vsel %vm250_vm0, %v207_v62, 0  ;;  %v3256_v62 = vsub.f32 %v202_v16, %v3227_v49 }
  0x61   : > { %527 = vmatmul.mubr.f32.gmra.mxu0 %v526_v55  ;;  %1471 = vmatpush1.msra.mxu1 %v2602_v15  ;;  %4533 = vst [vmem:[#allocation70_spill] sm:$0xff] %v3225_v25  ;;  %v3240_v55 = vsub.f32 %v288_v36, %v3211_v61  ;;  %v570_v36 = vsub.f32 %v3191_v60, %v4538_v39  ;;  %v3265_v56 = vand.u32 4294901760, %v294_v41  ;;  %v4542_v39 = vand.u32 4294901760, %v3209_v5 }
  0x62   : > { %994 = vmatmul.mubr.f32.gmra.mxu1 %v3014_v29  ;;  %1149 = vmatprep.subr.mxu0 %v4459_v54  ;;  %4539 = vst [vmem:[#allocation74_spill] sm:$0xff] %v3256_v62  ;;  %v3258_v29 = vand.u32 4294901760, %v204_v6  ;;  %v3273_v60 = vsub.f32 %v291_v59, %v3242_v43 }
  0x63   : > { %536 = vmatprep.mubr.f32.mxu0 %v535_v10  ;;  %999 = vmatprep.mubr.f32.mxu1 %v3028_v26  ;;  %4536 = vst [vmem:[#allocation72_spill] sm:$0xff] %v3240_v55  ;;  %v209_v10 = vld [vmem:[%s4202_s0 + $0xf8] sm:$0xff]  ;;  %4541 = vst [vmem:[#allocation76_spill] sm:$0xff] %v3265_v56  ;;  %v579_v16 = vsub.f32 %v3209_v5, %v4542_v39  ;;  %v4549_v26 = vand.u32 4294901760, %v3240_v55 }
  0x64   : > { %1152 = vmatpush1.msra.mxu0 %v2652_v37  ;;  %1472 = vmatprep.subr.mxu1 %v4459_v54  ;;  %4540 = vst [vmem:[#allocation75_spill] sm:$0xff] %v3258_v29  ;;  %4543 = vst [vmem:[#allocation77_spill] sm:$0xff] %v3273_v60  ;;  %v3286_v59 = vsub.f32 %v204_v6, %v3258_v29 }
  0x65   : > { %542 = vmatmul.mubr.f32.gmra.mxu0 %v541_v22  ;;  %1474 = vmatpush1.msra.mxu1 %v2613_v20  ;;  %v565_v22 = vand.u32 4294901760, %v564_v40  ;;  %v297_v20 = vsel %vm250_vm0, %v209_v10, 0  ;;  %v3278_v40 = vand.u32 4294901760, %v206_v12  ;;  %v211_v10 = vld [vmem:[%s4202_s0 + $0x108] sm:$0xff]  ;;  %v580_v6 = vand.u32 4294901760, %v579_v16 }
  0x66   : > { %1001 = vmatmul.mubr.f32.gmra.mxu1 %v3040_v17  ;;  %1153 = vmatprep.subr.mxu0 %v4459_v54  ;;  %4546 = vst [vmem:[#allocation79_spill] sm:$0xff] %v3286_v59  ;;  %v594_v17 = vsub.f32 %v3240_v55, %v4549_v26  ;;  %v4551_v16 = vand.u32 4294901760, %v3256_v62  ;;  %v213_v55 = vld [vmem:[%s4202_s0 + $0x118] sm:$0xff] }
  0x67   : > { %551 = vmatprep.mubr.f32.mxu0 %v550_v3  ;;  %1006 = vmatprep.mubr.f32.mxu1 %v3047_v32  ;;  %4544 = vst [vmem:[#allocation78_spill] sm:$0xff] %v3278_v40  ;;  %v571_v3 = vand.u32 4294901760, %v570_v36  ;;  %v4545_v32 = vand.u32 4294901760, %v3225_v25  ;;  %v3296_v36 = vand.u32 4294901760, %v297_v20 }
  0x68   : > { %1156 = vmatpush1.msra.mxu0 %v2669_v46  ;;  %1475 = vmatprep.subr.mxu1 %v4459_v54 }
  0x69   : > { %557 = vmatmul.mubr.f32.gmra.mxu0 %v556_v53  ;;  %1477 = vmatpush1.msra.mxu1 %v2630_v28  ;;  %v585_v39 = vsub.f32 %v3225_v25, %v4545_v32  ;;  %v3294_v53 = vsub.f32 %v294_v41, %v3265_v56  ;;  %4548 = vst [vmem:[#allocation81_spill] sm:$0xff] %v3296_v36  ;;  %v208_v32 = vld [vmem:[%s4202_s0 + $0xf0] sm:$0xff]  ;;  %v300_v25 = vsel %vm250_vm0, %v211_v10, 0  ;;  %v595_v10 = vand.u32 4294901760, %v594_v17 }
  0x6a   : > { %1008 = vmatmul.mubr.f32.gmra.mxu1 %v3072_v0  ;;  %1157 = vmatprep.subr.mxu0 %v4459_v54  ;;  %v3309_v41 = vsub.f32 %v206_v12, %v3278_v40  ;;  %v3317_v0 = vand.u32 4294901760, %v208_v32  ;;  %v303_v12 = vsel %vm250_vm0, %v213_v55, 0  ;;  %v4556_v17 = vand.u32 4294901760, %v3286_v59 }
  0x6b   : > { %4547 = vst [vmem:[#allocation80_spill] sm:$0xff] %v3294_v53  ;;  %566 = vmatprep.mubr.f32.mxu0 %v565_v22  ;;  %1013 = vmatprep.mubr.f32.mxu1 %v3087_v2  ;;  %v586_v22 = vand.u32 4294901760, %v585_v39  ;;  %v600_v2 = vsub.f32 %v3256_v62, %v4551_v16  ;;  %v210_v39 = vld [vmem:[%s4202_s0 + $0x100] sm:$0xff]  ;;  %v4554_v16 = vand.u32 4294901760, %v3273_v60  ;;  %v215_v62 = vld [vmem:[%s4202_s0 + $0x128] sm:$0xff]  ;;  %v4559_v55 = vand.u32 4294901760, %v3294_v53 }
  0x6c   : > { %1160 = vmatpush1.msra.mxu0 %v2676_v50  ;;  %1478 = vmatprep.subr.mxu1 %v4459_v54  ;;  %4550 = vst [vmem:[#allocation82_spill] sm:$0xff] %v3309_v41  ;;  %4552 = vst [vmem:[#allocation83_spill] sm:$0xff] %v3317_v0 }
  0x6d   : > { %572 = vmatmul.mubr.f32.gmra.mxu0 %v571_v3  ;;  %1480 = vmatpush1.msra.mxu1 %v2635_v31  ;;  %v3326_v3 = vsub.f32 %v297_v20, %v3296_v36  ;;  %v609_v26 = vsub.f32 %v3273_v60, %v4554_v16  ;;  %v3346_v16 = vsub.f32 %v208_v32, %v3317_v0  ;;  %v3348_v60 = vand.u32 4294901760, %v210_v39  ;;  %v212_v32 = vld [vmem:[%s4202_s0 + $0x110] sm:$0xff] }
  0x6e   : > { %1015 = vmatmul.mubr.f32.gmra.mxu1 %v3103_v4  ;;  %1161 = vmatprep.subr.mxu0 %v4459_v54  ;;  %v3335_v4 = vand.u32 4294901760, %v300_v25 }
  0x6f   : > { %4553 = vst [vmem:[#allocation84_spill] sm:$0xff] %v3326_v3  ;;  %581 = vmatprep.mubr.f32.mxu0 %v580_v6  ;;  %1020 = vmatprep.mubr.f32.mxu1 %v3111_v45  ;;  %v601_v6 = vand.u32 4294901760, %v600_v2  ;;  %v615_v45 = vsub.f32 %v3286_v59, %v4556_v17  ;;  %4557 = vst [vmem:[#allocation86_spill] sm:$0xff] %v3346_v16  ;;  %v624_v2 = vsub.f32 %v3294_v53, %v4559_v55 }
  0x70   : > { %4555 = vst [vmem:[#allocation85_spill] sm:$0xff] %v3335_v4  ;;  %1164 = vmatpush1.msra.mxu0 %v2690_v57  ;;  %1481 = vmatprep.subr.mxu1 %v4459_v54  ;;  %4558 = vst [vmem:[#allocation87_spill] sm:$0xff] %v3348_v60  ;;  %v610_v17 = vand.u32 4294901760, %v609_v26  ;;  %v3364_v20 = vsub.f32 %v300_v25, %v3335_v4  ;;  %v4562_v55 = vand.u32 4294901760, %v3309_v41  ;;  %v306_v53 = vsel %vm250_vm0, %v215_v62, 0 }
  0x71   : > { %587 = vmatmul.mubr.f32.gmra.mxu0 %v586_v22  ;;  %1483 = vmatpush1.msra.mxu1 %v2655_v38  ;;  %v616_v25 = vand.u32 4294901760, %v615_v45  ;;  %v3382_v59 = vand.u32 4294901760, %v212_v32  ;;  %v625_v62 = vand.u32 4294901760, %v624_v2  ;;  %v214_v45 = vld [vmem:[%s4202_s0 + $0x120] sm:$0xff]  ;;  %v3397_v26 = vand.u32 4294901760, %v306_v53 }
  0x72   : > { %1022 = vmatmul.mubr.f32.gmra.mxu1 %v3123_v47  ;;  %1165 = vmatprep.subr.mxu0 %v4459_v54  ;;  %4560 = vst [vmem:[#allocation88_spill] sm:$0xff] %v3364_v20  ;;  %v3366_v47 = vand.u32 4294901760, %v303_v12  ;;  %v630_v22 = vsub.f32 %v3309_v41, %v4562_v55  ;;  %v4565_v55 = vand.u32 4294901760, %v3326_v3 }
  0x73   : > { %596 = vmatprep.mubr.f32.mxu0 %v595_v10  ;;  %1027 = vmatprep.mubr.f32.mxu1 %v3141_v30  ;;  %v217_v10 = vld [vmem:[%s4202_s0 + $0x138] sm:$0xff]  ;;  %v3380_v30 = vsub.f32 %v210_v39, %v3348_v60  ;;  %4564 = vst [vmem:[#allocation91_spill] sm:$0xff] %v3382_v59  ;;  %4567 = vst [vmem:[#allocation93_spill] sm:$0xff] %v3397_v26 }
  0x74   : > { %4561 = vst [vmem:[#allocation89_spill] sm:$0xff] %v3366_v47  ;;  %1168 = vmatpush1.msra.mxu0 %v2703_v63  ;;  %1484 = vmatprep.subr.mxu1 %v4459_v54  ;;  %v639_v41 = vsub.f32 %v3326_v3, %v4565_v55  ;;  %v309_v2 = vsel %vm250_vm0, %v217_v10, 0  ;;  %v631_v55 = vand.u32 4294901760, %v630_v22  ;;  %v216_v10 = vld [vmem:[%s4202_s0 + $0x130] sm:$0xff]  ;;  %v219_v22 = vld [vmem:[%s4202_s0 + $0x148] sm:$0xff]  ;;  %v3428_v3 = vsub.f32 %v306_v53, %v3397_v26 }
  0x75   : > { %602 = vmatmul.mubr.f32.gmra.mxu0 %v601_v6  ;;  %1486 = vmatpush1.msra.mxu1 %v2672_v48  ;;  %4563 = vst [vmem:[#allocation90_spill] sm:$0xff] %v3380_v30  ;;  %v3395_v6 = vsub.f32 %v303_v12, %v3366_v47  ;;  %v3408_v12 = vsub.f32 %v212_v32, %v3382_v59 }
  0x76   : > { %1029 = vmatmul.mubr.f32.gmra.mxu1 %v3162_v35  ;;  %1169 = vmatprep.subr.mxu0 %v4459_v54  ;;  %v3410_v35 = vand.u32 4294901760, %v214_v45  ;;  %v640_v32 = vand.u32 4294901760, %v639_v41  ;;  %4572 = vst [vmem:[#allocation96_spill] sm:$0xff] %v3428_v3 }
  0x77   : > { %611 = vmatprep.mubr.f32.mxu0 %v610_v17  ;;  %1034 = vmatprep.mubr.f32.mxu1 %v3180_v1  ;;  %4566 = vst [vmem:[#allocation92_spill] sm:$0xff] %v3395_v6  ;;  %v4568_v17 = vand.u32 4294901760, %v3346_v16  ;;  %4569 = vst [vmem:[#allocation94_spill] sm:$0xff] %v3408_v12 }
  0x78   : > { %1172 = vmatpush1.msra.mxu0 %v2716_v11  ;;  %1487 = vmatprep.subr.mxu1 %v4459_v54  ;;  %4570 = vst [vmem:[#allocation95_spill] sm:$0xff] %v3410_v35  ;;  %v3441_v53 = vsub.f32 %v214_v45, %v3410_v35  ;;  %v4577_v45 = vand.u32 4294901760, %v3395_v6 }
  0x79   : > { %617 = vmatmul.mubr.f32.gmra.mxu0 %v616_v25  ;;  %1489 = vmatpush1.msra.mxu1 %v2680_v51  ;;  %v645_v1 = vsub.f32 %v3346_v16, %v4568_v17  ;;  %v3420_v25 = vand.u32 4294901760, %v309_v2  ;;  %v4571_v17 = vand.u32 4294901760, %v3364_v20  ;;  %v4574_v51 = vand.u32 4294901760, %v3380_v30 }
  0x7a   : > { %1036 = vmatmul.mubr.f32.gmra.mxu1 %v3193_v58  ;;  %1173 = vmatprep.subr.mxu0 %v4459_v54  ;;  %v3432_v58 = vand.u32 4294901760, %v216_v10  ;;  %4575 = vst [vmem:[#allocation97_spill] sm:$0xff] %v3441_v53 }
  0x7b   : > { %626 = vmatprep.mubr.f32.mxu0 %v625_v62  ;;  %1041 = vmatprep.mubr.f32.mxu1 %v3211_v61  ;;  %v654_v39 = vsub.f32 %v3364_v20, %v4571_v17  ;;  %v312_v62 = vsel %vm250_vm0, %v219_v22, 0  ;;  %v4573_v61 = vld [vmem:[#allocation5_spill] sm:$0xff]  ;;  %v646_v41 = vand.u32 4294901760, %v645_v1  ;;  %v660_v17 = vsub.f32 %v3380_v30, %v4574_v51  ;;  %v218_v51 = vld [vmem:[%s4202_s0 + $0x140] sm:$0xff] }
  0x7c   : > { %1176 = vmatpush1.msra.mxu0 %v2729_v34  ;;  %1490 = vmatprep.subr.mxu1 %v4459_v54  ;;  %v221_v20 = vld [vmem:[%s4202_s0 + $0x158] sm:$0xff]  ;;  %v669_v22 = vsub.f32 %v3395_v6, %v4577_v45  ;;  %v3472_v6 = vand.u32 4294901760, %v218_v51 }
  0x7d   : > { %632 = vmatmul.mubr.f32.gmra.mxu0 %v631_v55  ;;  %1492 = vmatpush1.msra.mxu1 %v4573_v61  ;;  %v3449_v55 = vsub.f32 %v309_v2, %v3420_v25  ;;  %v655_v1 = vand.u32 4294901760, %v654_v39  ;;  %v4578_v30 = vld [vmem:[#allocation9_spill] sm:$0xff]  ;;  %v3464_v2 = vsub.f32 %v216_v10, %v3432_v58  ;;  %v661_v39 = vand.u32 4294901760, %v660_v17  ;;  %v220_v10 = vld [vmem:[%s4202_s0 + $0x150] sm:$0xff] }
  0x7e   : > { %1043 = vmatmul.mubr.f32.gmra.mxu1 %v3227_v49  ;;  %1177 = vmatprep.subr.mxu0 %v4459_v54  ;;  %v3459_v49 = vand.u32 4294901760, %v312_v62  ;;  %v4581_v61 = vand.u32 4294901760, %v3408_v12 }
  0x7f   : > { %4576 = vst [vmem:[#allocation98_spill] sm:$0xff] %v3449_v55  ;;  %641 = vmatprep.mubr.f32.mxu0 %v640_v32  ;;  %1048 = vmatprep.mubr.f32.mxu1 %v3242_v43  ;;  %4579 = vst [vmem:[#allocation99_spill] sm:$0xff] %v3464_v2  ;;  %v315_v32 = vsel %vm250_vm0, %v221_v20, 0  ;;  %v4580_v43 = vld [vmem:[#allocation6_spill] sm:$0xff] }
  0x80   : > { %1180 = vmatpush1.msra.mxu0 %v4578_v30  ;;  %1493 = vmatprep.subr.mxu1 %v4459_v54  ;;  %v675_v45 = vsub.f32 %v3408_v12, %v4581_v61  ;;  %v223_v30 = vld [vmem:[%s4202_s0 + $0x168] sm:$0xff]  ;;  %v670_v61 = vand.u32 4294901760, %v669_v22  ;;  %v3488_v16 = vsub.f32 %v312_v62, %v3459_v49  ;;  %v3501_v62 = vsub.f32 %v218_v51, %v3472_v6 }
  0x81   : > { %647 = vmatmul.mubr.f32.gmra.mxu0 %v646_v41  ;;  %1495 = vmatpush1.msra.mxu1 %v4580_v43  ;;  %v4582_v41 = vand.u32 4294901760, %v3428_v3  ;;  %v4585_v12 = vld [vmem:[#allocation11_spill] sm:$0xff]  ;;  %v4587_v43 = vand.u32 4294901760, %v3441_v53 }
  0x82   : > { %1050 = vmatmul.mubr.f32.gmra.mxu1 %v3258_v29  ;;  %1181 = vmatprep.subr.mxu0 %v4459_v54  ;;  %4583 = vst [vmem:[#allocation100_spill] sm:$0xff] %v3488_v16  ;;  %v3490_v29 = vand.u32 4294901760, %v315_v32  ;;  %v676_v22 = vand.u32 4294901760, %v675_v45  ;;  %4588 = vst [vmem:[#allocation102_spill] sm:$0xff] %v3501_v62 }
  0x83   : > { %656 = vmatprep.mubr.f32.mxu0 %v655_v1  ;;  %1055 = vmatprep.mubr.f32.mxu1 %v3265_v56  ;;  %v684_v17 = vsub.f32 %v3428_v3, %v4582_v41  ;;  %v318_v1 = vsel %vm250_vm0, %v223_v30, 0  ;;  %v4586_v56 = vld [vmem:[#allocation7_spill] sm:$0xff]  ;;  %v690_v41 = vsub.f32 %v3441_v53, %v4587_v43  ;;  %v3503_v3 = vand.u32 4294901760, %v220_v10  ;;  %v222_v43 = vld [vmem:[%s4202_s0 + $0x160] sm:$0xff]  ;;  %v4592_v53 = vld [vmem:[#allocation13_spill] sm:$0xff] }
  0x84   : > { %4584 = vst [vmem:[#allocation101_spill] sm:$0xff] %v3490_v29  ;;  %1184 = vmatpush1.msra.mxu0 %v4585_v12  ;;  %1496 = vmatprep.subr.mxu1 %v4459_v54  ;;  %v225_v12 = vld [vmem:[%s4202_s0 + $0x178] sm:$0xff]  ;;  %v4590_v30 = vand.u32 4294901760, %v3449_v55  ;;  %v3519_v20 = vsub.f32 %v315_v32, %v3490_v29 }
  0x85   : > { %662 = vmatmul.mubr.f32.gmra.mxu0 %v661_v39  ;;  %1498 = vmatpush1.msra.mxu1 %v4586_v56  ;;  %4589 = vst [vmem:[#allocation103_spill] sm:$0xff] %v3503_v3  ;;  %v685_v51 = vand.u32 4294901760, %v684_v17  ;;  %v691_v17 = vand.u32 4294901760, %v690_v41  ;;  %v3532_v32 = vsub.f32 %v220_v10, %v3503_v3  ;;  %v3534_v56 = vand.u32 4294901760, %v222_v43 }
  0x86   : > { %1057 = vmatmul.mubr.f32.gmra.mxu1 %v3278_v40  ;;  %1185 = vmatprep.subr.mxu0 %v4459_v54  ;;  %v699_v39 = vsub.f32 %v3449_v55, %v4590_v30  ;;  %v3521_v40 = vand.u32 4294901760, %v318_v1  ;;  %v4593_v30 = vand.u32 4294901760, %v3464_v2 }
  0x87   : > { %671 = vmatprep.mubr.f32.mxu0 %v670_v61  ;;  %1062 = vmatprep.mubr.f32.mxu1 %v3296_v36  ;;  %v321_v61 = vsel %vm250_vm0, %v225_v12, 0  ;;  %v4594_v36 = vld [vmem:[#allocation8_spill] sm:$0xff]  ;;  %v3559_v10 = vsub.f32 %v222_v43, %v3534_v56  ;;  %v4603_v43 = vld [vmem:[#allocation17_spill] sm:$0xff] }
  0x88   : > { %4591 = vst [vmem:[#allocation104_spill] sm:$0xff] %v3521_v40  ;;  %1188 = vmatpush1.msra.mxu0 %v4592_v53  ;;  %1499 = vmatprep.subr.mxu1 %v4459_v54  ;;  %v705_v55 = vsub.f32 %v3464_v2, %v4593_v30  ;;  %4595 = vst [vmem:[#allocation8_spill] sm:$0xff] %v3534_v56  ;;  %v700_v53 = vand.u32 4294901760, %v699_v39  ;;  %v224_v12 = vld [vmem:[%s4202_s0 + $0x170] sm:$0xff]  ;;  %v3547_v30 = vsub.f32 %v318_v1, %v3521_v40 }
  0x89   : > { %677 = vmatmul.mubr.f32.gmra.mxu0 %v676_v22  ;;  %1501 = vmatpush1.msra.mxu1 %v4594_v36  ;;  %v4596_v22 = vand.u32 4294901760, %v3488_v16  ;;  %v3549_v45 = vand.u32 4294901760, %v321_v61  ;;  %v3561_v1 = vand.u32 4294901760, %v224_v12 }
  0x8a   : > { %1064 = vmatmul.mubr.f32.gmra.mxu1 %v3317_v0  ;;  %1205 = vmatprep.subr.mxu0 %v4459_v54  ;;  %v4598_v0 = vld [vmem:[#allocation15_spill] sm:$0xff]  ;;  %v706_v39 = vand.u32 4294901760, %v705_v55 }
  0x8b   : > { %686 = vmatprep.mubr.f32.mxu0 %v685_v51  ;;  %1069 = vmatprep.mubr.f32.mxu1 %v3335_v4  ;;  %v714_v41 = vsub.f32 %v3488_v16, %v4596_v22  ;;  %4597 = vst [vmem:[#allocation105_spill] sm:$0xff] %v3549_v45  ;;  %v4599_v51 = vld [vmem:[#allocation10_spill] sm:$0xff]  ;;  %v4600_v4 = vand.u32 4294901760, %v3501_v62  ;;  %4601 = vst [vmem:[#allocation15_spill] sm:$0xff] %v3561_v1  ;;  %v3571_v22 = vsub.f32 %v321_v61, %v3549_v45 }
  0x8c   : > { %1208 = vmatpush2.msra.mxu0 %v4598_v0  ;;  %1518 = vmatprep.subr.mxu1 %v4459_v54 }
  0x8d   : > { %692 = vmatmul.mubr.f32.gmra.mxu0 %v691_v17  ;;  %1520 = vmatpush2.msra.mxu1 %v4599_v51  ;;  %v720_v2 = vsub.f32 %v3501_v62, %v4600_v4  ;;  %v715_v55 = vand.u32 4294901760, %v714_v41  ;;  %v4602_v17 = vand.u32 4294901760, %v3519_v20  ;;  %v4417_v4 = vand.u32 4294901760, %v3547_v30 }
  0x8e   : > { %1071 = vmatmul.mubr.f32.gmra.mxu1 %v3348_v60  ;;  %1209 = vmatprep.subr.mxu0 %v4459_v54  ;;  %v4604_v60 = vld [vmem:[#allocation12_spill] sm:$0xff] }
  0x8f   : > { %701 = vmatprep.mubr.f32.mxu0 %v700_v53  ;;  %1076 = vmatprep.mubr.f32.mxu1 %v3366_v47  ;;  %v729_v16 = vsub.f32 %v3519_v20, %v4602_v17  ;;  %v721_v53 = vand.u32 4294901760, %v720_v2  ;;  %v4605_v47 = vand.u32 4294901760, %v3532_v32  ;;  %v3581_v17 = vsub.f32 %v224_v12, %v3561_v1  ;;  %v4607_v12 = vld [vmem:[#allocation14_spill] sm:$0xff] }
  0x90   : > { %1212 = vmatpush2.msra.mxu0 %v4603_v43  ;;  %1521 = vmatprep.subr.mxu1 %v4459_v54  ;;  %v744_v2 = vsub.f32 %v3547_v30, %v4417_v4 }
  0x91   : > { %707 = vmatmul.mubr.f32.gmra.mxu0 %v706_v39  ;;  %1523 = vmatpush2.msra.mxu1 %v4604_v60  ;;  %v735_v41 = vsub.f32 %v3532_v32, %v4605_v47  ;;  %v730_v61 = vand.u32 4294901760, %v729_v16  ;;  %v4423_v39 = vand.u32 4294901760, %v3571_v22  ;;  %v4606_v47 = vld [vmem:[#allocation20_spill] sm:$0xff]  ;;  %v4422_v16 = vand.u32 4294901760, %v3581_v17 }
  0x92   : > { %1078 = vmatmul.mubr.f32.gmra.mxu1 %v3382_v59  ;;  %1213 = vmatprep.subr.mxu0 %v4459_v54  ;;  %v4608_v59 = vand.u32 4294901760, %v3559_v10  ;;  %v745_v4 = vand.u32 4294901760, %v744_v2 }
  0x93   : > { %716 = vmatprep.mubr.f32.mxu0 %v715_v55  ;;  %1083 = vmatprep.mubr.f32.mxu1 %v3397_v26  ;;  %v736_v62 = vand.u32 4294901760, %v735_v41  ;;  %v4609_v26 = vld [vmem:[#allocation26_spill] sm:$0xff] }
  0x94   : > { %1216 = vmatpush2.msra.mxu0 %v4606_v47  ;;  %1524 = vmatprep.subr.mxu1 %v4459_v54  ;;  %v750_v55 = vsub.f32 %v3559_v10, %v4608_v59  ;;  %v4610_v59 = vld [vmem:[#allocation18_spill] sm:$0xff] }
  0x95   : > { %722 = vmatmul.mubr.f32.gmra.mxu0 %v721_v53  ;;  %1526 = vmatpush2.msra.mxu1 %v4607_v12  ;;  %v759_v53 = vsub.f32 %v3571_v22, %v4423_v39  ;;  %v4620_v39 = vld [vmem:[#allocation31_spill] sm:$0xff] }
  0x96   : > { %1085 = vmatmul.mubr.f32.gmra.mxu1 %v3410_v35  ;;  %1217 = vmatprep.subr.mxu0 %v4459_v54  ;;  %v751_v41 = vand.u32 4294901760, %v750_v55  ;;  %v765_v35 = vsub.f32 %v3581_v17, %v4422_v16  ;;  %v4612_v55 = vld [vmem:[#allocation34_spill] sm:$0xff]  ;;  %v4619_v16 = vld [vmem:[#allocation33_spill] sm:$0xff] }
  0x97   : > { %731 = vmatprep.mubr.f32.mxu0 %v730_v61  ;;  %1090 = vmatprep.mubr.f32.mxu1 %v3420_v25  ;;  %v760_v61 = vand.u32 4294901760, %v759_v53  ;;  %v4614_v53 = vld [vmem:[#allocation25_spill] sm:$0xff] }
  0x98   : > { %1220 = vmatpush2.msra.mxu0 %v4609_v26  ;;  %1527 = vmatprep.subr.mxu1 %v4459_v54  ;;  %v766_v2 = vand.u32 4294901760, %v765_v35  ;;  %v4615_v35 = vld [vmem:[#allocation24_spill] sm:$0xff] }
  0x99   : > { %737 = vmatmul.mubr.f32.gmra.mxu0 %v736_v62  ;;  %1529 = vmatpush2.msra.mxu1 %v4610_v59  ;;  %v4611_v62 = vld [vmem:[#allocation21_spill] sm:$0xff] }
  0x9a   : > { %1092 = vmatmul.mubr.f32.gmra.mxu1 %v3432_v58  ;;  %1221 = vmatprep.subr.mxu0 %v4459_v54 }
  0x9b   : > { %746 = vmatprep.mubr.f32.mxu0 %v745_v4  ;;  %1097 = vmatprep.mubr.f32.mxu1 %v3459_v49  ;;  %v4613_v4 = vld [vmem:[#allocation36_spill] sm:$0xff] }
  0x9c   : > { %1224 = vmatpush2.msra.mxu0 %v2875_v44  ;;  %1530 = vmatprep.subr.mxu1 %v4459_v54 }
  0x9d   : > { %752 = vmatmul.mubr.f32.gmra.mxu0 %v751_v41  ;;  %1532 = vmatpush2.msra.mxu1 %v4611_v62  ;;  %v4616_v41 = vld [vmem:[#allocation22_spill] sm:$0xff] }
  0x9e   : > { %1099 = vmatmul.mubr.f32.gmra.mxu1 %v3472_v6  ;;  %1225 = vmatprep.subr.mxu0 %v4459_v54 }
  0x9f   : > { %761 = vmatprep.mubr.f32.mxu0 %v760_v61  ;;  %1104 = vmatprep.mubr.f32.mxu1 %v3490_v29  ;;  %v4617_v61 = vld [vmem:[#allocation30_spill] sm:$0xff] }
  0xa0   : > { %1228 = vmatpush2.msra.mxu0 %v4612_v55  ;;  %1533 = vmatprep.subr.mxu1 %v4459_v54 }
  0xa1   : > { %767 = vmatmul.mubr.f32.gmra.mxu0 %v766_v2  ;;  %1229 = vmatprep.subr.mxu0 %v4459_v54  ;;  %v4618_v2 = vld [vmem:[#allocation29_spill] sm:$0xff] }
  0xa2   : > { %1106 = vmatmul.mubr.f32.gmra.mxu1 %v3503_v3  ;;  %1232 = vmatpush2.msra.mxu0 %v4613_v4  ;;  %v4623_v3 = vand.u32 4294901760, %v2608_v18  ;;  %v4626_v29 = vand.u32 4294901760, %v4618_v2  ;;  %v4628_v18 = vld [vmem:[#allocation40_spill] sm:$0xff] }
  0xa3   : > { %1535 = vmatpush2.msra.mxu1 %v4614_v53  ;;  %1233 = vmatprep.subr.mxu0 %v4459_v54 }
  0xa4   : > { %1111 = vmatprep.mubr.f32.mxu1 %v3521_v40  ;;  %1236 = vmatpush2.msra.mxu0 %v2943_v42  ;;  %v4621_v40 = vld [vmem:[#allocation35_spill] sm:$0xff] }
  0xa5   : > { %1239 = vmatprep.mubr.f32.mxu0 %v4615_v35  ;;  %1536 = vmatprep.subr.mxu1 %v4459_v54 }
  0xa6   : > { %1113 = vmatmul.mubr.f32.gmra.mxu1 %v3534_v56  ;;  %1242 = vmatmul.mubr.f32.vlgmr.msra.gmra.mxu0 %v4616_v41  ;;  %v4622_v56 = vand.u32 4294901760, %v4615_v35  ;;  %v4634_v35 = vand.u32 4294901760, %v2911_v27 }
  0xa7   : > { %1538 = vmatpush2.msra.mxu1 %v4617_v61  ;;  %1118 = vmatprep.mubr.f32.mxu1 %v3549_v45  ;;  %v4624_v45 = vand.u32 4294901760, %v4616_v41  ;;  %v4639_v41 = vand.u32 4294901760, %v4628_v18 }
  0xa8   : > { %1248 = vmatprep.mubr.f32.mxu0 %v4618_v2  ;;  %1539 = vmatprep.subr.mxu1 %v4459_v54 }
  0xa9   : > { %1541 = vmatpush2.msra.mxu1 %v4619_v16  ;;  %1807 = vmatprep.subr.mxu0 %v4459_v54 }
  0xaa   : > { %1120 = vmatmul.mubr.f32.gmra.mxu1 %v3561_v1  ;;  %1251 = vmatmul.mubr.f32.gmra.mxu0 %v4620_v39  ;;  %v4625_v1 = vld [vmem:[#allocation38_spill] sm:$0xff] }
  0xab   : > { %1257 = vmatprep.mubr.f32.mxu0 %v4621_v40  ;;  %1545 = vmatprep.mubr.f32.mxu1 %v4622_v56  ;;  %v4627_v56 = vand.u32 4294901760, %v2611_v19  ;;  %v4633_v19 = vld [vmem:[#allocation44_spill] sm:$0xff] }
  0xac   : > { %1811 = vmatpush1.msra.mxu0 %v4623_v3  ;;  %2112 = vmatprep.subr.mxu1 %v4459_v54  ;;  %v4629_v3 = vand.u32 4294901760, %v4620_v39  ;;  %v4636_v39 = vand.u32 4294901760, %v4625_v1 }
  0xad   : > { %1812 = vmatprep.subr.mxu0 %v4459_v54 }
  0xae   : > { %1260 = vmatmul.mubr.f32.gmra.mxu0 %v2911_v27  ;;  %1549 = vmatmul.mubr.f32.vlgmr.msra.gmra.mxu1 %v4624_v45  ;;  %v4631_v45 = vand.u32 4294901760, %v4621_v40  ;;  %v4637_v40 = vand.u32 4294901760, %v2621_v23  ;;  %v4641_v27 = vand.u32 4294901760, %v2624_v24  ;;  %v4642_v23 = vld [vmem:[#allocation51_spill] sm:$0xff] }
  0xaf   : > { %2114 = vmatpush1.msra.mxu1 %v2589_v7  ;;  %1266 = vmatprep.mubr.f32.mxu0 %v4625_v1  ;;  %v4630_v7 = vld [vmem:[#allocation43_spill] sm:$0xff]  ;;  %v4643_v1 = vand.u32 4294901760, %v4633_v19 }
  0xb0   : > { %1556 = vmatprep.mubr.f32.mxu1 %v4626_v29  ;;  %1816 = vmatpush1.msra.mxu0 %v4627_v56  ;;  %v4632_v29 = vand.u32 4294901760, %v2616_v21  ;;  %v4638_v21 = vld [vmem:[#allocation48_spill] sm:$0xff]  ;;  %v4646_v56 = vand.u32 4294901760, %v2639_v33  ;;  %v4647_v24 = vld [vmem:[#allocation55_spill] sm:$0xff] }
  0xb1   : > { %2115 = vmatprep.subr.mxu1 %v4459_v54  ;;  %1817 = vmatprep.subr.mxu0 %v4459_v54  ;;  %v4652_v33 = vld [vmem:[#allocation60_spill] sm:$0xff] }
  0xb2   : > { %1269 = vmatmul.mubr.f32.gmra.mxu0 %v4628_v18  ;;  %1560 = vmatmul.mubr.f32.gmra.mxu1 %v4629_v3  ;;  %v4648_v18 = vand.u32 4294901760, %v4638_v21  ;;  %v4650_v3 = vand.u32 4294901760, %v3057_v52 }
  0xb3   : > { %2117 = vmatpush1.msra.mxu1 %v2591_v8  ;;  %1275 = vmatprep.mubr.f32.mxu0 %v4630_v7  ;;  %v4635_v8 = vld [vmem:[#allocation46_spill] sm:$0xff] }
  0xb4   : > { %1567 = vmatprep.mubr.f32.mxu1 %v4631_v45  ;;  %1821 = vmatpush1.msra.mxu0 %v4632_v29  ;;  %v4645_v2 = vand.u32 4294901760, %v4635_v8  ;;  %v4653_v45 = vand.u32 4294901760, %v4642_v23  ;;  %v4654_v29 = vld [vmem:[#allocation3_spill] sm:$0xff] }
  0xb5   : > { %2118 = vmatprep.subr.mxu1 %v4459_v54  ;;  %1822 = vmatprep.subr.mxu0 %v4459_v54 }
  0xb6   : > { %1278 = vmatmul.mubr.f32.gmra.mxu0 %v4633_v19  ;;  %1571 = vmatmul.mubr.f32.gmra.mxu1 %v4634_v35  ;;  %v4659_v35 = vand.u32 4294901760, %v4647_v24 }
  0xb7   : > { %2120 = vmatpush1.msra.mxu1 %v2593_v9  ;;  %1284 = vmatprep.mubr.f32.mxu0 %v4635_v8  ;;  %v4640_v9 = vand.u32 4294901760, %v4630_v7  ;;  %v4651_v7 = vand.u32 4294901760, %v2652_v37  ;;  %v4658_v37 = vld [vmem:[#allocation63_spill] sm:$0xff]  ;;  %v4660_v8 = vld [vmem:[#allocation65_spill] sm:$0xff] }
  0xb8   : > { %1578 = vmatprep.mubr.f32.mxu1 %v4636_v39  ;;  %1826 = vmatpush1.msra.mxu0 %v4637_v40  ;;  %v4662_v40 = vand.u32 4294901760, %v2676_v50  ;;  %v4667_v50 = vld [vmem:[#allocation70_spill] sm:$0xff] }
  0xb9   : > { %2121 = vmatprep.subr.mxu1 %v4459_v54  ;;  %1827 = vmatprep.subr.mxu0 %v4459_v54 }
  0xba   : > { %1287 = vmatmul.mubr.f32.gmra.mxu0 %v4638_v21  ;;  %1582 = vmatmul.mubr.f32.gmra.mxu1 %v4639_v41  ;;  %v4664_v21 = vand.u32 4294901760, %v4652_v33  ;;  %v4666_v41 = vand.u32 4294901760, %v2690_v57  ;;  %v4672_v57 = vld [vmem:[#allocation74_spill] sm:$0xff] }
  0xbb   : > { %2123 = vmatpush1.msra.mxu1 %v2598_v13  ;;  %1293 = vmatprep.mubr.f32.mxu0 %v3057_v52  ;;  %v4644_v13 = vld [vmem:[#allocation53_spill] sm:$0xff]  ;;  %v4657_v52 = vand.u32 4294901760, %v2669_v46  ;;  %v4663_v46 = vld [vmem:[#allocation67_spill] sm:$0xff] }
  0xbc   : > { %1589 = vmatprep.mubr.f32.mxu1 %v4640_v9  ;;  %1831 = vmatpush1.msra.mxu0 %v4641_v27  ;;  %v4656_v19 = vand.u32 4294901760, %v4644_v13  ;;  %v4668_v9 = vand.u32 4294901760, %v4658_v37  ;;  %v4670_v27 = vand.u32 4294901760, %v4660_v8 }
  0xbd   : > { %2124 = vmatprep.subr.mxu1 %v4459_v54  ;;  %1832 = vmatprep.subr.mxu0 %v4459_v54 }
  0xbe   : > { %1296 = vmatmul.mubr.f32.gmra.mxu0 %v4642_v23  ;;  %1593 = vmatmul.mubr.f32.gmra.mxu1 %v4643_v1  ;;  %v4671_v23 = vand.u32 4294901760, %v2703_v63  ;;  %v4673_v1 = vand.u32 4294901760, %v4663_v46  ;;  %v4677_v63 = vld [vmem:[#allocation79_spill] sm:$0xff] }
  0xbf   : > { %2126 = vmatpush1.msra.mxu1 %v2600_v14  ;;  %1302 = vmatprep.mubr.f32.mxu0 %v4644_v13  ;;  %v4649_v14 = vld [vmem:[#allocation58_spill] sm:$0xff]  ;;  %v4675_v13 = vand.u32 4294901760, %v3209_v5 }
  0xc0   : > { %1600 = vmatprep.mubr.f32.mxu1 %v4645_v2  ;;  %1836 = vmatpush1.msra.mxu0 %v4646_v56  ;;  %v4661_v39 = vand.u32 4294901760, %v4649_v14  ;;  %v4676_v2 = vand.u32 4294901760, %v2716_v11  ;;  %v4678_v56 = vand.u32 4294901760, %v4667_v50  ;;  %v4683_v11 = vld [vmem:[#allocation82_spill] sm:$0xff] }
  0xc1   : > { %2127 = vmatprep.subr.mxu1 %v4459_v54  ;;  %1837 = vmatprep.subr.mxu0 %v4459_v54 }
  0xc2   : > { %1305 = vmatmul.mubr.f32.gmra.mxu0 %v4647_v24  ;;  %1604 = vmatmul.mubr.f32.gmra.mxu1 %v4648_v18  ;;  %v4679_v24 = vld [vmem:[#allocation4_spill] sm:$0xff] }
  0xc3   : > { %2129 = vmatpush1.msra.mxu1 %v2602_v15  ;;  %1311 = vmatprep.mubr.f32.mxu0 %v4649_v14  ;;  %v4655_v15 = vld [vmem:[#allocation61_spill] sm:$0xff]  ;;  %v4684_v14 = vand.u32 4294901760, %v4672_v57 }
  0xc4   : > { %1611 = vmatprep.mubr.f32.mxu1 %v4650_v3  ;;  %1841 = vmatpush1.msra.mxu0 %v4651_v7  ;;  %v4685_v3 = vld [vmem:[#allocation5_spill] sm:$0xff]  ;;  %v4686_v7 = vld [vmem:[#allocation84_spill] sm:$0xff] }
  0xc5   : > { %2130 = vmatprep.subr.mxu1 %v4459_v54  ;;  %1842 = vmatprep.subr.mxu0 %v4459_v54 }
  0xc6   : > { %1314 = vmatmul.mubr.f32.gmra.mxu0 %v4652_v33  ;;  %1615 = vmatmul.mubr.f32.gmra.mxu1 %v4653_v45  ;;  %v4688_v45 = vld [vmem:[#allocation9_spill] sm:$0xff] }
  0xc7   : > { %2132 = vmatpush1.msra.mxu1 %v4654_v29  ;;  %1320 = vmatprep.mubr.f32.mxu0 %v4655_v15  ;;  %v4689_v29 = vand.u32 4294901760, %v4688_v45 }
  0xc8   : > { %1622 = vmatprep.mubr.f32.mxu1 %v4656_v19  ;;  %1846 = vmatpush1.msra.mxu0 %v4657_v52  ;;  %v4692_v19 = vld [vmem:[#allocation6_spill] sm:$0xff]  ;;  %v4693_v52 = vld [vmem:[#allocation88_spill] sm:$0xff] }
  0xc9   : > { %2133 = vmatprep.subr.mxu1 %v4459_v54  ;;  %1847 = vmatprep.subr.mxu0 %v4459_v54 }
  0xca   : > { %1323 = vmatmul.mubr.f32.gmra.mxu0 %v4658_v37  ;;  %1626 = vmatmul.mubr.f32.gmra.mxu1 %v4659_v35  ;;  %v4695_v35 = vld [vmem:[#allocation11_spill] sm:$0xff] }
  0xcb   : > { %2135 = vmatpush1.msra.mxu1 %v2630_v28  ;;  %1329 = vmatprep.mubr.f32.mxu0 %v4660_v8  ;;  %v4665_v28 = vand.u32 4294901760, %v4655_v15  ;;  %v4691_v15 = vand.u32 4294901760, %v4677_v63  ;;  %v4696_v8 = vand.u32 4294901760, %v4695_v35 }
  0xcc   : > { %1633 = vmatprep.mubr.f32.mxu1 %v4661_v39  ;;  %1851 = vmatpush1.msra.mxu0 %v4662_v40  ;;  %v4697_v39 = vld [vmem:[#allocation90_spill] sm:$0xff]  ;;  %v4698_v40 = vand.u32 4294901760, %v4683_v11 }
  0xcd   : > { %2136 = vmatprep.subr.mxu1 %v4459_v54  ;;  %1852 = vmatprep.subr.mxu0 %v4459_v54 }
  0xce   : > { %1332 = vmatmul.mubr.f32.gmra.mxu0 %v4663_v46  ;;  %1637 = vmatmul.mubr.f32.gmra.mxu1 %v4664_v21  ;;  %v4699_v46 = vld [vmem:[#allocation7_spill] sm:$0xff]  ;;  %v4700_v21 = vld [vmem:[#allocation92_spill] sm:$0xff] }
  0xcf   : > { %2138 = vmatpush1.msra.mxu1 %v2635_v31  ;;  %1338 = vmatprep.mubr.f32.mxu0 %v3209_v5  ;;  %v4669_v31 = vld [vmem:[#allocation72_spill] sm:$0xff]  ;;  %v4682_v5 = vand.u32 4294901760, %v2729_v34  ;;  %v4690_v34 = vld [vmem:[#allocation86_spill] sm:$0xff] }
  0xd0   : > { %1644 = vmatprep.mubr.f32.mxu1 %v4665_v28  ;;  %1856 = vmatpush1.msra.mxu0 %v4666_v41  ;;  %v4681_v18 = vand.u32 4294901760, %v4669_v31  ;;  %v4701_v28 = vand.u32 4294901760, %v4686_v7  ;;  %v4702_v41 = vld [vmem:[#allocation13_spill] sm:$0xff] }
  0xd1   : > { %2139 = vmatprep.subr.mxu1 %v4459_v54  ;;  %1857 = vmatprep.subr.mxu0 %v4459_v54 }
  0xd2   : > { %1341 = vmatmul.mubr.f32.gmra.mxu0 %v4667_v50  ;;  %1648 = vmatmul.mubr.f32.gmra.mxu1 %v4668_v9  ;;  %v4703_v50 = vand.u32 4294901760, %v4702_v41  ;;  %v4704_v9 = vld [vmem:[#allocation94_spill] sm:$0xff] }
  0xd3   : > { %2141 = vmatpush1.msra.mxu1 %v2655_v38  ;;  %1347 = vmatprep.mubr.f32.mxu0 %v4669_v31  ;;  %v4674_v38 = vld [vmem:[#allocation77_spill] sm:$0xff]  ;;  %v4705_v31 = vand.u32 4294901760, %v4690_v34 }
  0xd4   : > { %1655 = vmatprep.mubr.f32.mxu1 %v4670_v27  ;;  %1861 = vmatpush1.msra.mxu0 %v4671_v23  ;;  %v4687_v33 = vand.u32 4294901760, %v4674_v38  ;;  %v4706_v27 = vld [vmem:[#allocation96_spill] sm:$0xff]  ;;  %v4707_v23 = vand.u32 4294901760, %v4693_v52 }
  0xd5   : > { %2142 = vmatprep.subr.mxu1 %v4459_v54  ;;  %1862 = vmatprep.subr.mxu0 %v4459_v54 }
  0xd6   : > { %1350 = vmatmul.mubr.f32.gmra.mxu0 %v4672_v57  ;;  %1659 = vmatmul.mubr.f32.gmra.mxu1 %v4673_v1  ;;  %v4708_v57 = vand.u32 4294901760, %v4598_v0  ;;  %v4709_v1 = vld [vmem:[#allocation97_spill] sm:$0xff]  ;;  %v4714_v0 = vld [vmem:[#allocation99_spill] sm:$0xff] }
  0xd7   : > { %2144 = vmatpush1.msra.mxu1 %v2672_v48  ;;  %1356 = vmatprep.mubr.f32.mxu0 %v4674_v38  ;;  %v4680_v48 = vld [vmem:[#allocation80_spill] sm:$0xff]  ;;  %v4710_v38 = vand.u32 4294901760, %v4697_v39 }
  0xd8   : > { %1666 = vmatprep.mubr.f32.mxu1 %v4675_v13  ;;  %1866 = vmatpush1.msra.mxu0 %v4676_v2  ;;  %v4694_v37 = vand.u32 4294901760, %v4680_v48  ;;  %v4712_v13 = vand.u32 4294901760, %v4700_v21  ;;  %v4713_v2 = vand.u32 4294901760, %v4603_v43  ;;  %v4719_v43 = vld [vmem:[#allocation102_spill] sm:$0xff] }
  0xd9   : > { %2145 = vmatprep.subr.mxu1 %v4459_v54  ;;  %1867 = vmatprep.subr.mxu0 %v4459_v54 }
  0xda   : > { %1359 = vmatmul.mubr.f32.gmra.mxu0 %v4677_v63  ;;  %1670 = vmatmul.mubr.f32.gmra.mxu1 %v4678_v56  ;;  %v4715_v63 = vand.u32 4294901760, %v4704_v9  ;;  %v4717_v56 = vand.u32 4294901760, %v4706_v27 }
  0xdb   : > { %2147 = vmatpush1.msra.mxu1 %v4679_v24  ;;  %1365 = vmatprep.mubr.f32.mxu0 %v4680_v48  ;;  %v4718_v24 = vand.u32 4294901760, %v4606_v47  ;;  %v4720_v48 = vand.u32 4294901760, %v4709_v1  ;;  %v4723_v47 = vand.u32 4294901760, %v4714_v0 }
  0xdc   : > { %1677 = vmatprep.mubr.f32.mxu1 %v4681_v18  ;;  %1871 = vmatpush1.msra.mxu0 %v4682_v5  ;;  %v4722_v18 = vand.u32 4294901760, %v4609_v26  ;;  %v4725_v5 = vand.u32 4294901760, %v2875_v44  ;;  %v4726_v26 = vand.u32 4294901760, %v4719_v43  ;;  %v4729_v44 = vand.u32 4294901760, %v3532_v32 }
  0xdd   : > { %2148 = vmatprep.subr.mxu1 %v4459_v54  ;;  %1872 = vmatprep.subr.mxu0 %v4459_v54 }
  0xde   : > { %1368 = vmatmul.mubr.f32.gmra.mxu0 %v4683_v11  ;;  %1681 = vmatmul.mubr.f32.gmra.mxu1 %v4684_v14  ;;  %v4728_v11 = vand.u32 4294901760, %v4612_v55  ;;  %v4730_v14 = vand.u32 4294901760, %v4613_v4  ;;  %v4733_v55 = vld [vmem:[#allocation2_spill] sm:$0xff] }
  0xdf   : > { %2150 = vmatpush1.msra.mxu1 %v4685_v3  ;;  %1374 = vmatprep.mubr.f32.mxu0 %v4686_v7  ;;  %v4734_v7 = vand.u32 4294901760, %v3559_v10 }
  0xe0   : > { %1688 = vmatprep.mubr.f32.mxu1 %v4687_v33  ;;  %1876 = vmatpush1.msra.mxu0 %v4689_v29  ;;  %v4738_v33 = vand.u32 4294901760, %v3581_v17  ;;  %v4740_v29 = vld [vmem:[#allocation27_spill] sm:$0xff] }
  0xe1   : > { %2151 = vmatprep.subr.mxu1 %v4459_v54  ;;  %1877 = vmatprep.subr.mxu0 %v4459_v54 }
  0xe2   : > { %1377 = vmatmul.mubr.f32.gmra.mxu0 %v4690_v34  ;;  %1692 = vmatmul.mubr.f32.gmra.mxu1 %v4691_v15 }
  0xe3   : > { %2153 = vmatpush1.msra.mxu1 %v4692_v19  ;;  %1383 = vmatprep.mubr.f32.mxu0 %v4693_v52 }
  0xe4   : > { %1699 = vmatprep.mubr.f32.mxu1 %v4694_v37  ;;  %1881 = vmatpush1.msra.mxu0 %v4696_v8  ;;  %v4743_v37 = vld [vmem:[#allocation37_spill] sm:$0xff] }
  0xe5   : > { %2154 = vmatprep.subr.mxu1 %v4459_v54  ;;  %1882 = vmatprep.subr.mxu0 %v4459_v54 }
  0xe6   : > { %1386 = vmatmul.mubr.f32.gmra.mxu0 %v4697_v39  ;;  %1703 = vmatmul.mubr.f32.gmra.mxu1 %v4698_v40  ;;  %v4744_v39 = vld [vmem:[#allocation39_spill] sm:$0xff] }
  0xe7   : > { %2156 = vmatpush1.msra.mxu1 %v4699_v46  ;;  %1392 = vmatprep.mubr.f32.mxu0 %v4700_v21 }
  0xe8   : > { %1710 = vmatprep.mubr.f32.mxu1 %v4701_v28  ;;  %1886 = vmatpush1.msra.mxu0 %v4703_v50  ;;  %v4745_v28 = vld [vmem:[#allocation41_spill] sm:$0xff] }
  0xe9   : > { %2157 = vmatprep.subr.mxu1 %v4459_v54  ;;  %1903 = vmatprep.subr.mxu0 %v4459_v54 }
  0xea   : > { %1395 = vmatmul.mubr.f32.gmra.mxu0 %v4704_v9  ;;  %1714 = vmatmul.mubr.f32.gmra.mxu1 %v4705_v31  ;;  %v4746_v9 = vld [vmem:[#allocation42_spill] sm:$0xff] }
  0xeb   : > { %2159 = vmatpush1.msra.mxu1 %v4594_v36  ;;  %1401 = vmatprep.mubr.f32.mxu0 %v4706_v27  ;;  %v4711_v36 = vld [vmem:[#allocation98_spill] sm:$0xff] }
  0xec   : > { %1721 = vmatprep.mubr.f32.mxu1 %v4707_v23  ;;  %1907 = vmatpush2.msra.mxu0 %v4708_v57  ;;  %v4747_v57 = vld [vmem:[#allocation45_spill] sm:$0xff] }
  0xed   : > { %2176 = vmatprep.subr.mxu1 %v4459_v54  ;;  %1908 = vmatprep.subr.mxu0 %v4459_v54 }
  0xee   : > { %1404 = vmatmul.mubr.f32.gmra.mxu0 %v4709_v1  ;;  %1725 = vmatmul.mubr.f32.gmra.mxu1 %v4710_v38 }
  0xef   : > { %2178 = vmatpush2.msra.mxu1 %v4599_v51  ;;  %1410 = vmatprep.mubr.f32.mxu0 %v4711_v36  ;;  %v4716_v51 = vld [vmem:[#allocation100_spill] sm:$0xff] }
  0xf0   : > { %1732 = vmatprep.mubr.f32.mxu1 %v4712_v13  ;;  %1912 = vmatpush2.msra.mxu0 %v4713_v2 }
  0xf1   : > { %2179 = vmatprep.subr.mxu1 %v4459_v54  ;;  %1913 = vmatprep.subr.mxu0 %v4459_v54 }
  0xf2   : > { %1413 = vmatmul.mubr.f32.gmra.mxu0 %v4714_v0  ;;  %1736 = vmatmul.mubr.f32.gmra.mxu1 %v4715_v63  ;;  %v4749_v63 = vld [vmem:[#allocation49_spill] sm:$0xff] }
  0xf3   : > { %2181 = vmatpush2.msra.mxu1 %v4604_v60  ;;  %1419 = vmatprep.mubr.f32.mxu0 %v4716_v51  ;;  %v4721_v60 = vand.u32 4294901760, %v4711_v36  ;;  %v4748_v36 = vld [vmem:[#allocation47_spill] sm:$0xff] }
  0xf4   : > { %1743 = vmatprep.mubr.f32.mxu1 %v4717_v56  ;;  %1917 = vmatpush2.msra.mxu0 %v4718_v24  ;;  %v4750_v24 = vld [vmem:[#allocation50_spill] sm:$0xff] }
  0xf5   : > { %2182 = vmatprep.subr.mxu1 %v4459_v54  ;;  %1918 = vmatprep.subr.mxu0 %v4459_v54 }
  0xf6   : > { %1422 = vmatmul.mubr.f32.gmra.mxu0 %v4719_v43  ;;  %1747 = vmatmul.mubr.f32.gmra.mxu1 %v4720_v48 }
  0xf7   : > { %2184 = vmatpush2.msra.mxu1 %v4607_v12  ;;  %1428 = vmatprep.mubr.f32.mxu0 %v3519_v20  ;;  %v4724_v12 = vand.u32 4294901760, %v4716_v51 }
  0xf8   : > { %1754 = vmatprep.mubr.f32.mxu1 %v4721_v60  ;;  %1922 = vmatpush2.msra.mxu0 %v4722_v18  ;;  %v4751_v18 = vld [vmem:[#allocation52_spill] sm:$0xff] }
  0xf9   : > { %2185 = vmatprep.subr.mxu1 %v4459_v54  ;;  %1923 = vmatprep.subr.mxu0 %v4459_v54 }
  0xfa   : > { %1431 = vmatmul.mubr.f32.gmra.mxu0 %v3532_v32  ;;  %1758 = vmatmul.mubr.f32.gmra.mxu1 %v4723_v47  ;;  %v4735_v32 = vld [vmem:[#allocation16_spill] sm:$0xff] }
  0xfb   : > { %2187 = vmatpush2.msra.mxu1 %v4610_v59  ;;  %1437 = vmatprep.mubr.f32.mxu0 %v3547_v30  ;;  %v4727_v59 = vand.u32 4294901760, %v3519_v20  ;;  %v4731_v20 = vand.u32 4294901760, %v3547_v30  ;;  %v4737_v30 = vld [vmem:[#allocation19_spill] sm:$0xff] }
  0xfc   : > { %1765 = vmatprep.mubr.f32.mxu1 %v4724_v12  ;;  %1927 = vmatpush2.msra.mxu0 %v4725_v5  ;;  %v4752_v5 = vld [vmem:[#allocation54_spill] sm:$0xff] }
  0xfd   : > { %2188 = vmatprep.subr.mxu1 %v4459_v54  ;;  %1928 = vmatprep.subr.mxu0 %v4459_v54 }
  0xfe   : > { %1440 = vmatmul.mubr.f32.gmra.mxu0 %v3559_v10  ;;  %1769 = vmatmul.mubr.f32.gmra.mxu1 %v4726_v26  ;;  %v4739_v10 = vld [vmem:[#allocation23_spill] sm:$0xff] }
  0xff   : > { %2190 = vmatpush2.msra.mxu1 %v4611_v62  ;;  %1446 = vmatprep.mubr.f32.mxu0 %v3571_v22  ;;  %v4732_v62 = vand.u32 4294901760, %v2943_v42 }
 0x100   : > { %1776 = vmatprep.mubr.f32.mxu1 %v4727_v59  ;;  %1932 = vmatpush2.msra.mxu0 %v4728_v11 }
 0x101   : > { %1933 = vmatprep.subr.mxu0 %v4459_v54  ;;  %2191 = vmatprep.subr.mxu1 %v4459_v54 }
 0x102   : > { %1449 = vmatmul.mubr.f32.gmra.mxu0 %v3581_v17  ;;  %1780 = vmatmul.mubr.f32.gmra.mxu1 %v4729_v44  ;;  %v4742_v17 = vld [vmem:[#allocation32_spill] sm:$0xff] }
 0x103   : > { %1937 = vmatpush2.msra.mxu0 %v4730_v14  ;;  %2193 = vmatpush2.msra.mxu1 %v4614_v53  ;;  %v4736_v53 = vand.u32 4294901760, %v3571_v22  ;;  %v4753_v44 = vld [vmem:[#allocation56_spill] sm:$0xff] }
 0x104   : > { %1938 = vmatprep.subr.mxu0 %v4459_v54  ;;  %1787 = vmatprep.mubr.f32.mxu1 %v4731_v20 }
 0x105   : > { %1942 = vmatpush2.msra.mxu0 %v4732_v62  ;;  %1944 = vmatprep.mubr.f32.mxu0 %v4733_v55  ;;  %v423_v3 = vpop.f32.mrf.mxu0  ;;  %v4754_v62 = vld [vmem:[#allocation57_spill] sm:$0xff] }
 0x106   : > { %1791 = vmatmul.mubr.f32.gmra.mxu1 %v4734_v7  ;;  %1946 = vmatmul.mubr.f32.vlgmr.msra.gmra.mxu0 %v4735_v32 }
 0x107   : > { %2194 = vmatprep.subr.mxu1 %v4459_v54  ;;  %v425_v4 = vpop.f32.mrf.mxu0  ;;  %1798 = vmatprep.mubr.f32.mxu1 %v4736_v53 }
 0x108   : > { %2196 = vmatpush2.msra.mxu1 %v4617_v61  ;;  %1951 = vmatprep.mubr.f32.mxu0 %v4737_v30  ;;  %v4741_v61 = vld [vmem:[#allocation28_spill] sm:$0xff] }
 0x109   : > { %v438_v42 = vpop.f32.mrf.mxu0  ;;  %2197 = vmatprep.subr.mxu1 %v4459_v54 }
 0x10a   : > { %1802 = vmatmul.mubr.f32.gmra.mxu1 %v4738_v33  ;;  %1953 = vmatmul.mubr.f32.gmra.mxu0 %v4739_v10 }
 0x10b   : > { %2199 = vmatpush2.msra.mxu1 %v4619_v16  ;;  %v440_v45 = vpop.f32.mrf.mxu0  ;;  %1958 = vmatprep.mubr.f32.mxu0 %v4740_v29 }
 0x10c   : > { %2201 = vmatprep.mubr.f32.mxu1 %v4733_v55  ;;  %v4757_v45 = vld [vmem:[#allocation64_spill] sm:$0xff] }
 0x10d   : > { %v453_v22 = vpop.f32.mrf.mxu0 }
 0x10e   : > { %v960_v34 = vpop.f32.mrf.mxu1  ;;  %1960 = vmatmul.mubr.f32.gmra.mxu0 %v4741_v61  ;;  %2203 = vmatmul.mubr.f32.vlgmr.msra.gmra.mxu1 %v4735_v32  ;;  %v4755_v32 = vld [vmem:[#allocation59_spill] sm:$0xff] }
 0x10f   : > { %v3906_v15 = vadd.f32 %v960_v34, %v423_v3  ;;  %v455_v54 = vpop.f32.mrf.mxu0  ;;  %1965 = vmatprep.mubr.f32.mxu0 %v4742_v17  ;;  %2208 = vmatprep.mubr.f32.mxu1 %v4737_v30  ;;  %v4756_v30 = vld [vmem:[#allocation62_spill] sm:$0xff] }
 0x110   : > { %v962_v19 = vpop.f32.mrf.mxu1  ;;  %v4758_v34 = vld [vmem:[#allocation66_spill] sm:$0xff] }
 0x111   : > { %v468_v16 = vpop.f32.mrf.mxu0  ;;  %v4759_v19 = vld [vmem:[#allocation68_spill] sm:$0xff] }
 0x112   : > { %v967_v52 = vpop.f32.mrf.mxu1  ;;  %1967 = vmatmul.mubr.f32.gmra.mxu0 %v4743_v37  ;;  %2210 = vmatmul.mubr.f32.gmra.mxu1 %v4739_v10 }
 0x113   : > { %v3912_v35 = vadd.f32 %v967_v52, %v438_v42  ;;  %v470_v8 = vpop.f32.mrf.mxu0  ;;  %1972 = vmatprep.mubr.f32.mxu0 %v4744_v39  ;;  %2215 = vmatprep.mubr.f32.mxu1 %v4740_v29 }
 0x114   : > { %v969_v40 = vpop.f32.mrf.mxu1 }
 0x115   : > { %v483_v46 = vpop.f32.mrf.mxu0 }
 0x116   : > { %v974_v21 = vpop.f32.mrf.mxu1  ;;  %1974 = vmatmul.mubr.f32.gmra.mxu0 %v4745_v28  ;;  %2217 = vmatmul.mubr.f32.gmra.mxu1 %v4741_v61 }
 0x117   : > { %v3918_v41 = vadd.f32 %v974_v21, %v453_v22  ;;  %v485_v50 = vpop.f32.mrf.mxu0  ;;  %1979 = vmatprep.mubr.f32.mxu0 %v4746_v9  ;;  %2222 = vmatprep.mubr.f32.mxu1 %v4742_v17 }
 0x118   : > { %v976_v31 = vpop.f32.mrf.mxu1  ;;  %v4762_v50 = vld [vmem:[#allocation73_spill] sm:$0xff] }
 0x119   : > { %v498_v27 = vpop.f32.mrf.mxu0 }
 0x11a   : > { %v981_v23 = vpop.f32.mrf.mxu1  ;;  %1981 = vmatmul.mubr.f32.gmra.mxu0 %v4747_v57  ;;  %2224 = vmatmul.mubr.f32.gmra.mxu1 %v4743_v37  ;;  %v4760_v37 = vld [vmem:[#allocation69_spill] sm:$0xff] }
 0x11b   : > { %v3924_v1 = vadd.f32 %v981_v23, %v468_v16  ;;  %v500_v38 = vpop.f32.mrf.mxu0  ;;  %1986 = vmatprep.mubr.f32.mxu0 %v4748_v36  ;;  %2229 = vmatprep.mubr.f32.mxu1 %v4744_v39  ;;  %v4763_v23 = vld [vmem:[#allocation75_spill] sm:$0xff] }
 0x11c   : > { %v983_v13 = vpop.f32.mrf.mxu1 }
 0x11d   : > { %v513_v2 = vpop.f32.mrf.mxu0 }
 0x11e   : > { %v988_v0 = vpop.f32.mrf.mxu1  ;;  %1988 = vmatmul.mubr.f32.gmra.mxu0 %v4749_v63  ;;  %2231 = vmatmul.mubr.f32.gmra.mxu1 %v4745_v28 }
 0x11f   : > { %v3930_v51 = vadd.f32 %v988_v0, %v483_v46  ;;  %v515_v56 = vpop.f32.mrf.mxu0  ;;  %1993 = vmatprep.mubr.f32.mxu0 %v4750_v24  ;;  %2236 = vmatprep.mubr.f32.mxu1 %v4746_v9  ;;  %v4761_v46 = vld [vmem:[#allocation71_spill] sm:$0xff] }
 0x120   : > { %v990_v43 = vpop.f32.mrf.mxu1 }
 0x121   : > { %v528_v48 = vpop.f32.mrf.mxu0  ;;  %v4766_v43 = vld [vmem:[#allocation81_spill] sm:$0xff] }
 0x122   : > { %v995_v60 = vpop.f32.mrf.mxu1  ;;  %1995 = vmatmul.mubr.f32.gmra.mxu0 %v4751_v18  ;;  %2238 = vmatmul.mubr.f32.gmra.mxu1 %v4747_v57 }
 0x123   : > { %v3936_v47 = vadd.f32 %v995_v60, %v498_v27  ;;  %v530_v12 = vpop.f32.mrf.mxu0  ;;  %2000 = vmatprep.mubr.f32.mxu0 %v4752_v5  ;;  %2243 = vmatprep.mubr.f32.mxu1 %v4748_v36  ;;  %v4764_v36 = vld [vmem:[#allocation76_spill] sm:$0xff] }
 0x124   : > { %v997_v26 = vpop.f32.mrf.mxu1  ;;  %v4767_v12 = vld [vmem:[#allocation83_spill] sm:$0xff] }
 0x125   : > { %v543_v59 = vpop.f32.mrf.mxu0 }
 0x126   : > { %v1002_v11 = vpop.f32.mrf.mxu1  ;;  %2002 = vmatmul.mubr.f32.gmra.mxu0 %v4753_v44  ;;  %2245 = vmatmul.mubr.f32.gmra.mxu1 %v4749_v63  ;;  %v4765_v63 = vld [vmem:[#allocation78_spill] sm:$0xff] }
 0x127   : > { %v3942_v14 = vadd.f32 %v1002_v11, %v513_v2  ;;  %v545_v20 = vpop.f32.mrf.mxu0  ;;  %2007 = vmatprep.mubr.f32.mxu0 %v4754_v62  ;;  %2250 = vmatprep.mubr.f32.mxu1 %v4750_v24 }
 0x128   : > { %v1004_v55 = vpop.f32.mrf.mxu1 }
 0x129   : > { %v558_v3 = vpop.f32.mrf.mxu0 }
 0x12a   : > { %v1009_v7 = vpop.f32.mrf.mxu1  ;;  %2009 = vmatmul.mubr.f32.gmra.mxu0 %v4755_v32  ;;  %2252 = vmatmul.mubr.f32.gmra.mxu1 %v4751_v18 }
 0x12b   : > { %v3948_v4 = vadd.f32 %v1009_v7, %v528_v48  ;;  %v560_v53 = vpop.f32.mrf.mxu0  ;;  %2014 = vmatprep.mubr.f32.mxu0 %v4756_v30  ;;  %2257 = vmatprep.mubr.f32.mxu1 %v4752_v5  ;;  %v4770_v7 = vld [vmem:[#allocation89_spill] sm:$0xff] }
 0x12c   : > { %v1011_v42 = vpop.f32.mrf.mxu1 }
 0x12d   : > { %v573_v33 = vpop.f32.mrf.mxu0  ;;  %v4771_v42 = vld [vmem:[#allocation91_spill] sm:$0xff] }
 0x12e   : > { %v1016_v10 = vpop.f32.mrf.mxu1  ;;  %2016 = vmatmul.mubr.f32.gmra.mxu0 %v4757_v45  ;;  %2259 = vmatmul.mubr.f32.gmra.mxu1 %v4753_v44 }
 0x12f   : > { %v3954_v29 = vadd.f32 %v1016_v10, %v543_v59  ;;  %v575_v22 = vpop.f32.mrf.mxu0  ;;  %2021 = vmatprep.mubr.f32.mxu0 %v4758_v34  ;;  %2264 = vmatprep.mubr.f32.mxu1 %v4754_v62  ;;  %v4768_v59 = vld [vmem:[#allocation85_spill] sm:$0xff]  ;;  %v4769_v62 = vld [vmem:[#allocation87_spill] sm:$0xff] }
 0x130   : > { %v1018_v61 = vpop.f32.mrf.mxu1 }
 0x131   : > { %v588_v54 = vpop.f32.mrf.mxu0 }
 0x132   : > { %v1023_v17 = vpop.f32.mrf.mxu1  ;;  %2023 = vmatmul.mubr.f32.gmra.mxu0 %v4759_v19  ;;  %2266 = vmatmul.mubr.f32.gmra.mxu1 %v4755_v32 }
 0x133   : > { %v3960_v16 = vadd.f32 %v1023_v17, %v558_v3  ;;  %v590_v52 = vpop.f32.mrf.mxu0  ;;  %2028 = vmatprep.mubr.f32.mxu0 %v4760_v37  ;;  %2271 = vmatprep.mubr.f32.mxu1 %v4756_v30 }
 0x134   : > { %v1025_v8 = vpop.f32.mrf.mxu1 }
 0x135   : > { %v603_v39 = vpop.f32.mrf.mxu0 }
 0x136   : > { %v1030_v40 = vpop.f32.mrf.mxu1  ;;  %2030 = vmatmul.mubr.f32.gmra.mxu0 %v4761_v46  ;;  %2273 = vmatmul.mubr.f32.gmra.mxu1 %v4757_v45  ;;  %v4772_v45 = vld [vmem:[#allocation93_spill] sm:$0xff] }
 0x137   : > { %v3966_v21 = vadd.f32 %v1030_v40, %v573_v33  ;;  %v605_v28 = vpop.f32.mrf.mxu0  ;;  %2035 = vmatprep.mubr.f32.mxu0 %v4762_v50  ;;  %2278 = vmatprep.mubr.f32.mxu1 %v4758_v34 }
 0x138   : > { %v1032_v9 = vpop.f32.mrf.mxu1 }
 0x139   : > { %v618_v31 = vpop.f32.mrf.mxu0 }
 0x13a   : > { %v1037_v27 = vpop.f32.mrf.mxu1  ;;  %2037 = vmatmul.mubr.f32.gmra.mxu0 %v4763_v23  ;;  %2280 = vmatmul.mubr.f32.gmra.mxu1 %v4759_v19 }
 0x13b   : > { %v3972_v57 = vadd.f32 %v1037_v27, %v588_v54  ;;  %v620_v38 = vpop.f32.mrf.mxu0  ;;  %2042 = vmatprep.mubr.f32.mxu0 %v4764_v36  ;;  %2285 = vmatprep.mubr.f32.mxu1 %v4760_v37  ;;  %v4773_v54 = vld [vmem:[#allocation95_spill] sm:$0xff]  ;;  %v4774_v27 = vld [vmem:[#allocation101_spill] sm:$0xff] }
 0x13c   : > { %v1039_v13 = vpop.f32.mrf.mxu1 }
 0x13d   : > { %v633_v2 = vpop.f32.mrf.mxu0  ;;  %v4775_v13 = vld [vmem:[#allocation103_spill] sm:$0xff] }
 0x13e   : > { %v1044_v0 = vpop.f32.mrf.mxu1  ;;  %2044 = vmatmul.mubr.f32.gmra.mxu0 %v4765_v63  ;;  %2287 = vmatmul.mubr.f32.gmra.mxu1 %v4761_v46 }
 0x13f   : > { %v3978_v56 = vadd.f32 %v1044_v0, %v603_v39  ;;  %v635_v24 = vpop.f32.mrf.mxu0  ;;  %2049 = vmatprep.mubr.f32.mxu0 %v4766_v43  ;;  %2292 = vmatprep.mubr.f32.mxu1 %v4762_v50 }
 0x140   : > { %v1046_v48 = vpop.f32.mrf.mxu1 }
 0x141   : > { %v648_v60 = vpop.f32.mrf.mxu0 }
 0x142   : > { %v1051_v18 = vpop.f32.mrf.mxu1  ;;  %2051 = vmatmul.mubr.f32.gmra.mxu0 %v4767_v12  ;;  %2294 = vmatmul.mubr.f32.gmra.mxu1 %v4763_v23 }
 0x143   : > { %v3984_v5 = vadd.f32 %v1051_v18, %v618_v31  ;;  %v650_v26 = vpop.f32.mrf.mxu0  ;;  %2056 = vmatprep.mubr.f32.mxu0 %v4768_v59  ;;  %2299 = vmatprep.mubr.f32.mxu1 %v4764_v36 }
 0x144   : > { %v1053_v11 = vpop.f32.mrf.mxu1 }
 0x145   : > { %v663_v44 = vpop.f32.mrf.mxu0  ;;  %v4779_v11 = vld [vmem:[#allocation15_spill] sm:$0xff] }
 0x146   : > { %v1058_v20 = vpop.f32.mrf.mxu1  ;;  %2058 = vmatmul.mubr.f32.gmra.mxu0 %v4769_v62  ;;  %2301 = vmatmul.mubr.f32.gmra.mxu1 %v4765_v63  ;;  %v4776_v63 = vld [vmem:[#allocation104_spill] sm:$0xff] }
 0x147   : > { %v3990_v55 = vadd.f32 %v1058_v20, %v633_v2  ;;  %v665_v3 = vpop.f32.mrf.mxu0  ;;  %2063 = vmatprep.mubr.f32.mxu0 %v4770_v7  ;;  %2306 = vmatprep.mubr.f32.mxu1 %v4766_v43 }
 0x148   : > { %v1060_v32 = vpop.f32.mrf.mxu1 }
 0x149   : > { %v678_v53 = vpop.f32.mrf.mxu0 }
 0x14a   : > { %v1065_v30 = vpop.f32.mrf.mxu1  ;;  %2065 = vmatmul.mubr.f32.gmra.mxu0 %v4771_v42  ;;  %2308 = vmatmul.mubr.f32.gmra.mxu1 %v4767_v12  ;;  %v4778_v12 = vld [vmem:[#allocation105_spill] sm:$0xff] }
 0x14b   : > { %v3996_v33 = vadd.f32 %v1065_v30, %v648_v60  ;;  %v680_v10 = vpop.f32.mrf.mxu0  ;;  %2070 = vmatprep.mubr.f32.mxu0 %v4772_v45  ;;  %2313 = vmatprep.mubr.f32.mxu1 %v4768_v59  ;;  %v4777_v60 = vld [vmem:[#allocation8_spill] sm:$0xff] }
 0x14c   : > { %v1067_v22 = vpop.f32.mrf.mxu1 }
 0x14d   : > { %v693_v34 = vpop.f32.mrf.mxu0 }
 0x14e   : > { %v1072_v61 = vpop.f32.mrf.mxu1  ;;  %2072 = vmatmul.mubr.f32.gmra.mxu0 %v4773_v54  ;;  %2315 = vmatmul.mubr.f32.gmra.mxu1 %v4769_v62 }
 0x14f   : > { %v4002_v17 = vadd.f32 %v1072_v61, %v663_v44  ;;  %v695_v19 = vpop.f32.mrf.mxu0  ;;  %2077 = vmatprep.mubr.f32.mxu0 %v3420_v25  ;;  %2320 = vmatprep.mubr.f32.mxu1 %v4770_v7 }
 0x150   : > { %v1074_v52 = vpop.f32.mrf.mxu1 }
 0x151   : > { %v708_v37 = vpop.f32.mrf.mxu0 }
 0x152   : > { %v1079_v8 = vpop.f32.mrf.mxu1  ;;  %2079 = vmatmul.mubr.f32.gmra.mxu0 %v3432_v58  ;;  %2322 = vmatmul.mubr.f32.gmra.mxu1 %v4771_v42 }
 0x153   : > { %v4008_v39 = vadd.f32 %v1079_v8, %v678_v53  ;;  %v710_v40 = vpop.f32.mrf.mxu0  ;;  %2084 = vmatprep.mubr.f32.mxu0 %v3459_v49  ;;  %2327 = vmatprep.mubr.f32.mxu1 %v4772_v45 }
 0x154   : > { %v1081_v46 = vpop.f32.mrf.mxu1 }
 0x155   : > { %v723_v28 = vpop.f32.mrf.mxu0 }
 0x156   : > { %v1086_v50 = vpop.f32.mrf.mxu1  ;;  %2086 = vmatmul.mubr.f32.gmra.mxu0 %v3472_v6  ;;  %2329 = vmatmul.mubr.f32.gmra.mxu1 %v4773_v54 }
 0x157   : > { %v4014_v9 = vadd.f32 %v1086_v50, %v693_v34  ;;  %v725_v31 = vpop.f32.mrf.mxu0  ;;  %2091 = vmatprep.mubr.f32.mxu0 %v4774_v27  ;;  %2334 = vmatprep.mubr.f32.mxu1 %v3420_v25 }
 0x158   : > { %v1088_v23 = vpop.f32.mrf.mxu1 }
 0x159   : > { %v738_v38 = vpop.f32.mrf.mxu0 }
 0x15a   : > { %v1093_v36 = vpop.f32.mrf.mxu1  ;;  %2093 = vmatmul.mubr.f32.gmra.mxu0 %v4775_v13  ;;  %2336 = vmatmul.mubr.f32.gmra.mxu1 %v3432_v58 }
 0x15b   : > { %v4020_v2 = vadd.f32 %v1093_v36, %v708_v37  ;;  %v740_v0 = vpop.f32.mrf.mxu0  ;;  %2098 = vmatprep.mubr.f32.mxu0 %v4776_v63  ;;  %2341 = vmatprep.mubr.f32.mxu1 %v3459_v49 }
 0x15c   : > { %v1095_v24 = vpop.f32.mrf.mxu1 }
 0x15d   : > { %v753_v43 = vpop.f32.mrf.mxu0 }
 0x15e   : > { %v1100_v48 = vpop.f32.mrf.mxu1  ;;  %2100 = vmatmul.mubr.f32.gmra.mxu0 %v4777_v60  ;;  %2343 = vmatmul.mubr.f32.gmra.mxu1 %v3472_v6 }
 0x15f   : > { %v4026_v25 = vadd.f32 %v1100_v48, %v723_v28  ;;  %v755_v18 = vpop.f32.mrf.mxu0  ;;  %2105 = vmatprep.mubr.f32.mxu0 %v4778_v12  ;;  %2348 = vmatprep.mubr.f32.mxu1 %v4774_v27 }
 0x160   : > { %v1102_v58 = vpop.f32.mrf.mxu1 }
 0x161   : > { %v768_v26 = vpop.f32.mrf.mxu0 }
 0x162   : > { %v1107_v59 = vpop.f32.mrf.mxu1  ;;  %2107 = vmatmul.mubr.f32.gmra.mxu0 %v4779_v11  ;;  %2350 = vmatmul.mubr.f32.gmra.mxu1 %v4775_v13 }
 0x163   : > { %v4032_v49 = vadd.f32 %v1107_v59, %v738_v38  ;;  %v770_v44 = vpop.f32.mrf.mxu0  ;;  %2355 = vmatprep.mubr.f32.mxu1 %v4776_v63 }
 0x164   : > { %v1109_v6 = vpop.f32.mrf.mxu1 }
 0x166   : > { %v1114_v20 = vpop.f32.mrf.mxu1  ;;  %v1243_v62 = vpop.f32.mrf.mxu0  ;;  %2357 = vmatmul.mubr.f32.gmra.mxu1 %v4777_v60 }
 0x167   : > { %v4036_v3 = vadd.f32 %v1114_v20, %v753_v43  ;;  %v1244_v7 = vadd.f32 %v1243_v62, %v3906_v15  ;;  %2362 = vmatprep.mubr.f32.mxu1 %v4778_v12 }
 0x168   : > { %v1116_v32 = vpop.f32.mrf.mxu1  ;;  %v1245_v53 = vpop.f32.mrf.mxu0 }
 0x16a   : > { %v1121_v30 = vpop.f32.mrf.mxu1  ;;  %v1252_v42 = vpop.f32.mrf.mxu0  ;;  %2364 = vmatmul.mubr.f32.gmra.mxu1 %v4779_v11 }
 0x16b   : > { %v4041_v10 = vadd.f32 %v1121_v30, %v768_v26  ;;  %v1253_v45 = vadd.f32 %v1252_v42, %v3912_v35 }
 0x16c   : > { %v1123_v22 = vpop.f32.mrf.mxu1  ;;  %v1254_v34 = vpop.f32.mrf.mxu0 }
 0x16e   : > { %v1261_v61 = vpop.f32.mrf.mxu0  ;;  %v1550_v54 = vpop.f32.mrf.mxu1 }
 0x16f   : > { %v1262_v19 = vadd.f32 %v1261_v61, %v3918_v41  ;;  %v4045_v52 = vadd.f32 %v1550_v54, %v1244_v7 }
 0x170   : > { %v1263_v15 = vpop.f32.mrf.mxu0  ;;  %v1552_v37 = vpop.f32.mrf.mxu1 }
 0x172   : > { %v1270_v8 = vpop.f32.mrf.mxu0  ;;  %v1561_v40 = vpop.f32.mrf.mxu1 }
 0x173   : > { %v1271_v46 = vadd.f32 %v1270_v8, %v3924_v1  ;;  %v4048_v28 = vadd.f32 %v1561_v40, %v1253_v45 }
 0x174   : > { %v1272_v50 = vpop.f32.mrf.mxu0  ;;  %v1563_v31 = vpop.f32.mrf.mxu1 }
 0x176   : > { %v1279_v27 = vpop.f32.mrf.mxu0  ;;  %v1572_v35 = vpop.f32.mrf.mxu1 }
 0x177   : > { %v1280_v23 = vadd.f32 %v1279_v27, %v3930_v51  ;;  %v4051_v38 = vadd.f32 %v1572_v35, %v1262_v19 }
 0x178   : > { %v1281_v36 = vpop.f32.mrf.mxu0  ;;  %v1574_v41 = vpop.f32.mrf.mxu1 }
 0x17a   : > { %v1288_v13 = vpop.f32.mrf.mxu0  ;;  %v1583_v0 = vpop.f32.mrf.mxu1 }
 0x17b   : > { %v1289_v63 = vadd.f32 %v1288_v13, %v3936_v47  ;;  %v4054_v24 = vadd.f32 %v1583_v0, %v1271_v46 }
 0x17c   : > { %v1290_v43 = vpop.f32.mrf.mxu0  ;;  %v1585_v1 = vpop.f32.mrf.mxu1 }
 0x17e   : > { %v1297_v48 = vpop.f32.mrf.mxu0  ;;  %v1594_v60 = vpop.f32.mrf.mxu1 }
 0x17f   : > { %v1298_v18 = vadd.f32 %v1297_v48, %v3942_v14  ;;  %v4057_v12 = vadd.f32 %v1594_v60, %v1280_v23 }
 0x180   : > { %v1299_v58 = vpop.f32.mrf.mxu0  ;;  %v1596_v51 = vpop.f32.mrf.mxu1 }
 0x182   : > { %v1306_v26 = vpop.f32.mrf.mxu0  ;;  %v1605_v59 = vpop.f32.mrf.mxu1 }
 0x183   : > { %v1307_v11 = vadd.f32 %v1306_v26, %v3948_v4  ;;  %v4060_v44 = vadd.f32 %v1605_v59, %v1289_v63 }
 0x184   : > { %v1308_v6 = vpop.f32.mrf.mxu0  ;;  %v1607_v47 = vpop.f32.mrf.mxu1 }
 0x186   : > { %v1315_v20 = vpop.f32.mrf.mxu0  ;;  %v1616_v62 = vpop.f32.mrf.mxu1 }
 0x187   : > { %v1316_v7 = vadd.f32 %v1315_v20, %v3954_v29  ;;  %v4063_v32 = vadd.f32 %v1616_v62, %v1298_v18 }
 0x188   : > { %v1317_v53 = vpop.f32.mrf.mxu0  ;;  %v1618_v14 = vpop.f32.mrf.mxu1 }
 0x18a   : > { %v1324_v30 = vpop.f32.mrf.mxu0  ;;  %v1627_v42 = vpop.f32.mrf.mxu1 }
 0x18b   : > { %v1325_v45 = vadd.f32 %v1324_v30, %v3960_v16  ;;  %v4066_v22 = vadd.f32 %v1627_v42, %v1307_v11 }
 0x18c   : > { %v1326_v34 = vpop.f32.mrf.mxu0  ;;  %v1629_v4 = vpop.f32.mrf.mxu1 }
 0x18e   : > { %v1333_v61 = vpop.f32.mrf.mxu0  ;;  %v1638_v54 = vpop.f32.mrf.mxu1 }
 0x18f   : > { %v1334_v19 = vadd.f32 %v1333_v61, %v3966_v21  ;;  %v4069_v15 = vadd.f32 %v1638_v54, %v1316_v7 }
 0x190   : > { %v1335_v37 = vpop.f32.mrf.mxu0  ;;  %v1640_v29 = vpop.f32.mrf.mxu1 }
 0x192   : > { %v1342_v8 = vpop.f32.mrf.mxu0  ;;  %v1649_v40 = vpop.f32.mrf.mxu1 }
 0x193   : > { %v1343_v46 = vadd.f32 %v1342_v8, %v3972_v57  ;;  %v4072_v50 = vadd.f32 %v1649_v40, %v1325_v45 }
 0x194   : > { %v1344_v31 = vpop.f32.mrf.mxu0  ;;  %v1651_v16 = vpop.f32.mrf.mxu1 }
 0x196   : > { %v1351_v27 = vpop.f32.mrf.mxu0  ;;  %v1660_v35 = vpop.f32.mrf.mxu1 }
 0x197   : > { %v1352_v23 = vadd.f32 %v1351_v27, %v3978_v56  ;;  %v4075_v36 = vadd.f32 %v1660_v35, %v1334_v19 }
 0x198   : > { %v1353_v41 = vpop.f32.mrf.mxu0  ;;  %v1662_v21 = vpop.f32.mrf.mxu1 }
 0x19a   : > { %v1360_v13 = vpop.f32.mrf.mxu0  ;;  %v1671_v0 = vpop.f32.mrf.mxu1 }
 0x19b   : > { %v1361_v63 = vadd.f32 %v1360_v13, %v3984_v5  ;;  %v4078_v43 = vadd.f32 %v1671_v0, %v1343_v46 }
 0x19c   : > { %v1362_v1 = vpop.f32.mrf.mxu0  ;;  %v1673_v57 = vpop.f32.mrf.mxu1 }
 0x19e   : > { %v1369_v48 = vpop.f32.mrf.mxu0  ;;  %v1682_v60 = vpop.f32.mrf.mxu1 }
 0x19f   : > { %v1370_v18 = vadd.f32 %v1369_v48, %v3990_v55  ;;  %v4081_v58 = vadd.f32 %v1682_v60, %v1352_v23 }
 0x1a0   : > { %v1371_v51 = vpop.f32.mrf.mxu0  ;;  %v1684_v56 = vpop.f32.mrf.mxu1 }
 0x1a2   : > { %v1378_v26 = vpop.f32.mrf.mxu0  ;;  %v1693_v59 = vpop.f32.mrf.mxu1 }
 0x1a3   : > { %v1379_v11 = vadd.f32 %v1378_v26, %v3996_v33  ;;  %v4084_v6 = vadd.f32 %v1693_v59, %v1361_v63 }
 0x1a4   : > { %v1380_v47 = vpop.f32.mrf.mxu0  ;;  %v1695_v5 = vpop.f32.mrf.mxu1 }
 0x1a6   : > { %v1387_v20 = vpop.f32.mrf.mxu0  ;;  %v1704_v62 = vpop.f32.mrf.mxu1 }
 0x1a7   : > { %v1388_v7 = vadd.f32 %v1387_v20, %v4002_v17  ;;  %v4087_v53 = vadd.f32 %v1704_v62, %v1370_v18 }
 0x1a8   : > { %v1389_v14 = vpop.f32.mrf.mxu0  ;;  %v1706_v55 = vpop.f32.mrf.mxu1 }
 0x1aa   : > { %v1396_v30 = vpop.f32.mrf.mxu0  ;;  %v1715_v42 = vpop.f32.mrf.mxu1 }
 0x1ab   : > { %v1397_v45 = vadd.f32 %v1396_v30, %v4008_v39  ;;  %v4090_v34 = vadd.f32 %v1715_v42, %v1379_v11 }
 0x1ac   : > { %v1398_v4 = vpop.f32.mrf.mxu0  ;;  %v1717_v33 = vpop.f32.mrf.mxu1 }
 0x1ae   : > { %v1405_v61 = vpop.f32.mrf.mxu0  ;;  %v1726_v54 = vpop.f32.mrf.mxu1 }
 0x1af   : > { %v1406_v19 = vadd.f32 %v1405_v61, %v4014_v9  ;;  %v4093_v37 = vadd.f32 %v1726_v54, %v1388_v7 }
 0x1b0   : > { %v1407_v29 = vpop.f32.mrf.mxu0  ;;  %v1728_v17 = vpop.f32.mrf.mxu1 }
 0x1b2   : > { %v1414_v8 = vpop.f32.mrf.mxu0  ;;  %v1737_v40 = vpop.f32.mrf.mxu1 }
 0x1b3   : > { %v1415_v46 = vadd.f32 %v1414_v8, %v4020_v2  ;;  %v4096_v31 = vadd.f32 %v1737_v40, %v1397_v45 }
 0x1b4   : > { %v1416_v16 = vpop.f32.mrf.mxu0  ;;  %v1739_v39 = vpop.f32.mrf.mxu1 }
 0x1b6   : > { %v1423_v27 = vpop.f32.mrf.mxu0  ;;  %v1748_v35 = vpop.f32.mrf.mxu1 }
 0x1b7   : > { %v1424_v23 = vadd.f32 %v1423_v27, %v4026_v25  ;;  %v4099_v41 = vadd.f32 %v1748_v35, %v1406_v19 }
 0x1b8   : > { %v1425_v21 = vpop.f32.mrf.mxu0  ;;  %v1750_v9 = vpop.f32.mrf.mxu1 }
 0x1ba   : > { %v1432_v13 = vpop.f32.mrf.mxu0  ;;  %v1759_v0 = vpop.f32.mrf.mxu1 }
 0x1bb   : > { %v1433_v63 = vadd.f32 %v1432_v13, %v4032_v49  ;;  %v4102_v1 = vadd.f32 %v1759_v0, %v1415_v46 }
 0x1bc   : > { %v1434_v57 = vpop.f32.mrf.mxu0  ;;  %v1761_v2 = vpop.f32.mrf.mxu1 }
 0x1be   : > { %v1441_v48 = vpop.f32.mrf.mxu0  ;;  %v1770_v60 = vpop.f32.mrf.mxu1 }
 0x1bf   : > { %v1442_v18 = vadd.f32 %v1441_v48, %v4036_v3  ;;  %v4105_v51 = vadd.f32 %v1770_v60, %v1424_v23 }
 0x1c0   : > { %v1443_v56 = vpop.f32.mrf.mxu0  ;;  %v1772_v25 = vpop.f32.mrf.mxu1 }
 0x1c2   : > { %v1450_v26 = vpop.f32.mrf.mxu0  ;;  %v1781_v59 = vpop.f32.mrf.mxu1 }
 0x1c3   : > { %v1451_v11 = vadd.f32 %v1450_v26, %v4041_v10  ;;  %v4108_v47 = vadd.f32 %v1781_v59, %v1433_v63 }
 0x1c4   : > { %v1452_v49 = vpop.f32.mrf.mxu0  ;;  %v1783_v5 = vpop.f32.mrf.mxu1 }
 0x1c6   : > { %v1792_v20 = vpop.f32.mrf.mxu1  ;;  %v1947_v62 = vpop.f32.mrf.mxu0 }
 0x1c7   : > { %v4110_v7 = vadd.f32 %v1792_v20, %v1442_v18  ;;  %v1948_v33 = vadd.f32 %v1947_v62, %v4045_v52 }
 0x1c8   : > { %v1794_v14 = vpop.f32.mrf.mxu1  ;;  %v1949_v55 = vpop.f32.mrf.mxu0 }
 0x1ca   : > { %v1803_v3 = vpop.f32.mrf.mxu1  ;;  %v1954_v30 = vpop.f32.mrf.mxu0 }
 0x1cb   : > { %v4112_v42 = vadd.f32 %v1803_v3, %v1451_v11  ;;  %v1955_v17 = vadd.f32 %v1954_v30, %v4048_v28 }
 0x1cc   : > { %v1805_v45 = vpop.f32.mrf.mxu1  ;;  %v1956_v4 = vpop.f32.mrf.mxu0 }
 0x1ce   : > { %v1961_v10 = vpop.f32.mrf.mxu0  ;;  %v2204_v61 = vpop.f32.mrf.mxu1 }
 0x1cf   : > { %v2205_v54 = vadd.f32 %v2204_v61, %v1948_v33  ;;  %v1962_v39 = vadd.f32 %v1961_v10, %v4051_v38 }
 0x1d0   : > { %v1963_v19 = vpop.f32.mrf.mxu0  ;;  %v2206_v29 = vpop.f32.mrf.mxu1 }
 0x1d1   : > { %2370 = vst.msk [vmem:[%s4120_s24] sm:$0xff] %vm2369_vm1, %v2205_v54 }
 0x1d2   : > { %v1968_v52 = vpop.f32.mrf.mxu0  ;;  %v2211_v8 = vpop.f32.mrf.mxu1 }
 0x1d3   : > { %v2212_v40 = vadd.f32 %v2211_v8, %v1955_v17  ;;  %v1969_v28 = vadd.f32 %v1968_v52, %v4054_v24 }
 0x1d4   : > { %v1970_v46 = vpop.f32.mrf.mxu0  ;;  %v2213_v16 = vpop.f32.mrf.mxu1 }
 0x1d5   : > { %2371 = vst.msk [vmem:[%s4120_s24 + $0x8] sm:$0xff] %vm2369_vm1, %v2212_v40 }
 0x1d6   : > { %v1975_v27 = vpop.f32.mrf.mxu0  ;;  %v2218_v35 = vpop.f32.mrf.mxu1 }
 0x1d7   : > { %v2219_v23 = vadd.f32 %v2218_v35, %v1962_v39  ;;  %v1976_v38 = vadd.f32 %v1975_v27, %v4057_v12 }
 0x1d8   : > { %v1977_v21 = vpop.f32.mrf.mxu0  ;;  %v2220_v9 = vpop.f32.mrf.mxu1 }
 0x1d9   : > { %2372 = vst.msk [vmem:[%s4120_s24 + $0x10] sm:$0xff] %vm2369_vm1, %v2219_v23 }
 0x1da   : > { %v1982_v13 = vpop.f32.mrf.mxu0  ;;  %v2225_v0 = vpop.f32.mrf.mxu1 }
 0x1db   : > { %v2226_v63 = vadd.f32 %v2225_v0, %v1969_v28  ;;  %v1983_v24 = vadd.f32 %v1982_v13, %v4060_v44 }
 0x1dc   : > { %v1984_v57 = vpop.f32.mrf.mxu0  ;;  %v2227_v2 = vpop.f32.mrf.mxu1 }
 0x1dd   : > { %2373 = vst.msk [vmem:[%s4120_s24 + $0x18] sm:$0xff] %vm2369_vm1, %v2226_v63 }
 0x1de   : > { %v1989_v48 = vpop.f32.mrf.mxu0  ;;  %v2232_v60 = vpop.f32.mrf.mxu1 }
 0x1df   : > { %v2233_v18 = vadd.f32 %v2232_v60, %v1976_v38  ;;  %v1990_v12 = vadd.f32 %v1989_v48, %v4063_v32 }
 0x1e0   : > { %v1991_v56 = vpop.f32.mrf.mxu0  ;;  %v2234_v25 = vpop.f32.mrf.mxu1 }
 0x1e1   : > { %2374 = vst.msk [vmem:[%s4120_s24 + $0x20] sm:$0xff] %vm2369_vm1, %v2233_v18 }
 0x1e2   : > { %v1996_v26 = vpop.f32.mrf.mxu0  ;;  %v2239_v59 = vpop.f32.mrf.mxu1 }
 0x1e3   : > { %v2240_v11 = vadd.f32 %v2239_v59, %v1983_v24  ;;  %v1997_v44 = vadd.f32 %v1996_v26, %v4066_v22 }
 0x1e4   : > { %v1998_v49 = vpop.f32.mrf.mxu0  ;;  %v2241_v5 = vpop.f32.mrf.mxu1 }
 0x1e5   : > { %2375 = vst.msk [vmem:[%s4120_s24 + $0x28] sm:$0xff] %vm2369_vm1, %v2240_v11 }
 0x1e6   : > { %v2003_v20 = vpop.f32.mrf.mxu0  ;;  %v2246_v62 = vpop.f32.mrf.mxu1 }
 0x1e7   : > { %v2247_v14 = vadd.f32 %v2246_v62, %v1990_v12  ;;  %v2004_v32 = vadd.f32 %v2003_v20, %v4069_v15 }
 0x1e8   : > { %v2005_v55 = vpop.f32.mrf.mxu0  ;;  %v2248_v3 = vpop.f32.mrf.mxu1 }
 0x1e9   : > { %2376 = vst.msk [vmem:[%s4120_s24 + $0x30] sm:$0xff] %vm2369_vm1, %v2247_v14 }
 0x1ea   : > { %v2010_v30 = vpop.f32.mrf.mxu0  ;;  %v2253_v45 = vpop.f32.mrf.mxu1 }
 0x1eb   : > { %v2254_v4 = vadd.f32 %v2253_v45, %v1997_v44  ;;  %v2011_v22 = vadd.f32 %v2010_v30, %v4072_v50 }
 0x1ec   : > { %v2012_v33 = vpop.f32.mrf.mxu0  ;;  %v2255_v10 = vpop.f32.mrf.mxu1 }
 0x1ed   : > { %2377 = vst.msk [vmem:[%s4120_s24 + $0x38] sm:$0xff] %vm2369_vm1, %v2254_v4 }
 0x1ee   : > { %v2017_v61 = vpop.f32.mrf.mxu0  ;;  %v2260_v54 = vpop.f32.mrf.mxu1 }
 0x1ef   : > { %v2261_v19 = vadd.f32 %v2260_v54, %v2004_v32  ;;  %v2018_v15 = vadd.f32 %v2017_v61, %v4075_v36 }
 0x1f0   : > { %v2019_v29 = vpop.f32.mrf.mxu0  ;;  %v2262_v17 = vpop.f32.mrf.mxu1 }
 0x1f1   : > { %2378 = vst.msk [vmem:[%s4120_s24 + $0x40] sm:$0xff] %vm2369_vm1, %v2261_v19 }
 0x1f2   : > { %v2024_v52 = vpop.f32.mrf.mxu0  ;;  %v2267_v8 = vpop.f32.mrf.mxu1 }
 0x1f3   : > { %v2268_v40 = vadd.f32 %v2267_v8, %v2011_v22  ;;  %v2025_v50 = vadd.f32 %v2024_v52, %v4078_v43 }
 0x1f4   : > { %v2026_v46 = vpop.f32.mrf.mxu0  ;;  %v2269_v16 = vpop.f32.mrf.mxu1 }
 0x1f5   : > { %2379 = vst.msk [vmem:[%s4120_s24 + $0x48] sm:$0xff] %vm2369_vm1, %v2268_v40 }
 0x1f6   : > { %v2031_v39 = vpop.f32.mrf.mxu0  ;;  %v2274_v27 = vpop.f32.mrf.mxu1 }
 0x1f7   : > { %v2275_v35 = vadd.f32 %v2274_v27, %v2018_v15  ;;  %v2032_v36 = vadd.f32 %v2031_v39, %v4081_v58 }
 0x1f8   : > { %v2033_v23 = vpop.f32.mrf.mxu0  ;;  %v2276_v21 = vpop.f32.mrf.mxu1 }
 0x1f9   : > { %2380 = vst.msk [vmem:[%s4120_s24 + $0x50] sm:$0xff] %vm2369_vm1, %v2275_v35 }
 0x1fa   : > { %v2038_v9 = vpop.f32.mrf.mxu0  ;;  %v2281_v28 = vpop.f32.mrf.mxu1 }
 0x1fb   : > { %v2282_v13 = vadd.f32 %v2281_v28, %v2025_v50  ;;  %v2039_v43 = vadd.f32 %v2038_v9, %v4084_v6 }
 0x1fc   : > { %v2040_v0 = vpop.f32.mrf.mxu0  ;;  %v2283_v63 = vpop.f32.mrf.mxu1 }
 0x1fd   : > { %2381 = vst.msk [vmem:[%s4120_s24 + $0x58] sm:$0xff] %vm2369_vm1, %v2282_v13 }
 0x1fe   : > { %v2045_v57 = vpop.f32.mrf.mxu0  ;;  %v2288_v2 = vpop.f32.mrf.mxu1 }
 0x1ff   : > { %v2289_v38 = vadd.f32 %v2288_v2, %v2032_v36  ;;  %v2046_v58 = vadd.f32 %v2045_v57, %v4087_v53 }
 0x200   : > { %v2047_v48 = vpop.f32.mrf.mxu0  ;;  %v2290_v60 = vpop.f32.mrf.mxu1 }
 0x201   : > { %2382 = vst.msk [vmem:[%s4120_s24 + $0x60] sm:$0xff] %vm2369_vm1, %v2289_v38 }
 0x202   : > { %v2052_v18 = vpop.f32.mrf.mxu0  ;;  %v2295_v56 = vpop.f32.mrf.mxu1 }
 0x203   : > { %v2296_v25 = vadd.f32 %v2295_v56, %v2039_v43  ;;  %v2053_v6 = vadd.f32 %v2052_v18, %v4090_v34 }
 0x204   : > { %v2054_v24 = vpop.f32.mrf.mxu0  ;;  %v2297_v26 = vpop.f32.mrf.mxu1 }
 0x205   : > { %2383 = vst.msk [vmem:[%s4120_s24 + $0x68] sm:$0xff] %vm2369_vm1, %v2296_v25 }
 0x206   : > { %v2059_v59 = vpop.f32.mrf.mxu0  ;;  %v2302_v11 = vpop.f32.mrf.mxu1 }
 0x207   : > { %v2303_v49 = vadd.f32 %v2302_v11, %v2046_v58  ;;  %v2060_v53 = vadd.f32 %v2059_v59, %v4093_v37 }
 0x208   : > { %v2061_v5 = vpop.f32.mrf.mxu0  ;;  %v2304_v12 = vpop.f32.mrf.mxu1 }
 0x209   : > { %2384 = vst.msk [vmem:[%s4120_s24 + $0x70] sm:$0xff] %vm2369_vm1, %v2303_v49 }
 0x20a   : > { %v2066_v20 = vpop.f32.mrf.mxu0  ;;  %v2309_v62 = vpop.f32.mrf.mxu1 }
 0x20b   : > { %v2310_v14 = vadd.f32 %v2309_v62, %v2053_v6  ;;  %v2067_v34 = vadd.f32 %v2066_v20, %v4096_v31 }
 0x20c   : > { %v2068_v55 = vpop.f32.mrf.mxu0  ;;  %v2311_v3 = vpop.f32.mrf.mxu1 }
 0x20d   : > { %2385 = vst.msk [vmem:[%s4120_s24 + $0x78] sm:$0xff] %vm2369_vm1, %v2310_v14 }
 0x20e   : > { %v2073_v44 = vpop.f32.mrf.mxu0  ;;  %v2316_v30 = vpop.f32.mrf.mxu1 }
 0x20f   : > { %v2317_v45 = vadd.f32 %v2316_v30, %v2060_v53  ;;  %v2074_v37 = vadd.f32 %v2073_v44, %v4099_v41 }
 0x210   : > { %v2075_v4 = vpop.f32.mrf.mxu0  ;;  %v2318_v33 = vpop.f32.mrf.mxu1 }
 0x211   : > { %2386 = vst.msk [vmem:[%s4120_s24 + $0x80] sm:$0xff] %vm2369_vm1, %v2317_v45 }
 0x212   : > { %v2080_v10 = vpop.f32.mrf.mxu0  ;;  %v2323_v32 = vpop.f32.mrf.mxu1 }
 0x213   : > { %v2324_v61 = vadd.f32 %v2323_v32, %v2067_v34  ;;  %v2081_v31 = vadd.f32 %v2080_v10, %v4102_v1 }
 0x214   : > { %v2082_v54 = vpop.f32.mrf.mxu0  ;;  %v2325_v19 = vpop.f32.mrf.mxu1 }
 0x215   : > { %2387 = vst.msk [vmem:[%s4120_s24 + $0x88] sm:$0xff] %vm2369_vm1, %v2324_v61 }
 0x216   : > { %v2087_v29 = vpop.f32.mrf.mxu0  ;;  %v2330_v17 = vpop.f32.mrf.mxu1 }
 0x217   : > { %v2331_v22 = vadd.f32 %v2330_v17, %v2074_v37  ;;  %v2088_v41 = vadd.f32 %v2087_v29, %v4105_v51 }
 0x218   : > { %v2089_v52 = vpop.f32.mrf.mxu0  ;;  %v2332_v8 = vpop.f32.mrf.mxu1 }
 0x219   : > { %2388 = vst.msk [vmem:[%s4120_s24 + $0x90] sm:$0xff] %vm2369_vm1, %v2331_v22 }
 0x21a   : > { %v2094_v40 = vpop.f32.mrf.mxu0  ;;  %v2337_v46 = vpop.f32.mrf.mxu1 }
 0x21b   : > { %v2338_v16 = vadd.f32 %v2337_v46, %v2081_v31  ;;  %v2095_v1 = vadd.f32 %v2094_v40, %v4108_v47 }
 0x21c   : > { %v2096_v15 = vpop.f32.mrf.mxu0  ;;  %v2339_v39 = vpop.f32.mrf.mxu1 }
 0x21d   : > { %2389 = vst.msk [vmem:[%s4120_s24 + $0x98] sm:$0xff] %vm2369_vm1, %v2338_v16 }
 0x21e   : > { %v2101_v27 = vpop.f32.mrf.mxu0  ;;  %v2344_v35 = vpop.f32.mrf.mxu1 }
 0x21f   : > { %v2345_v23 = vadd.f32 %v2344_v35, %v2088_v41  ;;  %v2102_v51 = vadd.f32 %v2101_v27, %v4110_v7 }
 0x220   : > { %v2103_v21 = vpop.f32.mrf.mxu0  ;;  %v2346_v50 = vpop.f32.mrf.mxu1 }
 0x221   : > { %2390 = vst.msk [vmem:[%s4120_s24 + $0xa0] sm:$0xff] %vm2369_vm1, %v2345_v23 }
 0x222   : > { %v2108_v9 = vpop.f32.mrf.mxu0  ;;  %v2351_v28 = vpop.f32.mrf.mxu1 }
 0x223   : > { %v2352_v13 = vadd.f32 %v2351_v28, %v2095_v1  ;;  %v2109_v38 = vadd.f32 %v2108_v9, %v4112_v42 }
 0x224   : > { %v2353_v0 = vpop.f32.mrf.mxu1  ;;  %v2110_v63 = vpop.f32.mrf.mxu0 }
 0x225   : > { %2391 = vst.msk [vmem:[%s4120_s24 + $0xa8] sm:$0xff] %vm2369_vm1, %v2352_v13 }
 0x226   : > { %v2358_v36 = vpop.f32.mrf.mxu1 }
 0x227   : > { %v2359_v57 = vadd.f32 %v2358_v36, %v2102_v51 }
 0x228   : > { %v2360_v2 = vpop.f32.mrf.mxu1 }
 0x229   : > { %2392 = vst.msk [vmem:[%s4120_s24 + $0xb0] sm:$0xff] %vm2369_vm1, %v2359_v57 }
 0x22a   : > { %v2365_v47 = vpop.f32.mrf.mxu1 }
 0x22b   : > { %v2366_v48 = vadd.f32 %v2365_v47, %v2109_v38 }
 0x22c   : > { %v2367_v60 = vpop.f32.mrf.mxu1 }
 0x22d   : > { %2393 = vst.msk [vmem:[%s4120_s24 + $0xb8] sm:$0xff] %vm2369_vm1, %v2366_v48 }
 0x22e PF: > { %s12_s11 = sadd.s32 1, %s2528_s11   ;;  %s4780_s9 = smov %s2524_s10 }
 0x22f   : > { %p9_p5 = scmp.ge.s32.totalorder %s12_s11, 4   ;;  %s4781_s10 = smov %s4783_s12 }
 0x231   :  { %11 = sbr.rel (!%p9_p5) target bundleno = 2 (0x2), region = 58 }

</bundles_post_ra>
